<compile_context>
chip_gen: v7x
topology: tpu7x:2x2x1
jax: 0.10.0
libtpu: 0.0.40
codegen_flags: <defaults>
</compile_context>

<pallas_src>
import numpy as np
import jax
import jax.numpy as jnp
from jax.experimental import pallas as pl
from jax.experimental.pallas import tpu as pltpu

IO = 240.0        # transmitted light intensity
ALPHA = 1.0       # angle percentile
BETA = 0.15       # OD threshold for transparent pixels
_HEREF = ((0.5626, 0.2159),
          (0.7201, 0.8012),
          (0.4062, 0.5581))          # torchstain reference H&E OD matrix
_MAXCREF = (1.9705, 1.0308)          # torchstain reference max stain concentrations

LANES = 128          # lane width: last dim of every packed per-pixel array
MAX_TILE_ROWS = 512  # 512 sublanes * 128 lanes = 64K pixels per grid step
_NSTATS = 16         # 10 used stats (n, 3 sums, 6 second moments), padded to multiple of 8

_CPARAMS = pltpu.CompilerParams(
    dimension_semantics=("parallel",),    # shard pixel grid over v7x's 2 TensorCores
    vmem_limit_bytes=32 * 1024 * 1024,    # explicit budget: safe on v7x's 64 MiB VMEM
)


def _choose_tiling(npix):
    """Static (tile_rows, grid_rows) with rows = tile_rows*grid_rows >= ceil(npix/128)."""
    rows_needed = -(-npix // LANES)
    if rows_needed <= MAX_TILE_ROWS:
        return rows_needed, 1
    grid_rows = -(-rows_needed // MAX_TILE_ROWS)
    return MAX_TILE_ROWS, grid_rows


# ------------------------------ Pallas kernels ------------------------------

def _od_stats_kernel(x_ref, od_ref, mask_ref, stats_ref):
    """OD = -log((255*x+1)/Io); mask = all-channel OD >= beta; fused cov partials.

    stats rows (per-lane partial sums over this tile's sublanes):
      0: sum(mask)   1..3: sum(mask*od_c)   4..9: sum(mask*od_a*od_b), a <= b
    """
    od = -jnp.log((x_ref[...] * 255.0 + 1.0) * (1.0 / IO))      # (3, TR, 128)
    od_ref[...] = od                                            # one full-block store
    keep = (od[0] >= BETA) & (od[1] >= BETA) & (od[2] >= BETA)  # (TR, 128)
    m = keep.astype(jnp.float32)
    mask_ref[...] = m                                           # dense full-width store
    od_m = od * m[None, :, :]

    stats_ref[...] = jnp.zeros_like(stats_ref)
    stats_ref[0:1, :] = jnp.sum(m, axis=0, keepdims=True)
    row = 1
    for ch in range(3):
        stats_ref[row:row + 1, :] = jnp.sum(od_m[ch], axis=0, keepdims=True)
        row += 1
    for a in range(3):
        for b in range(a, 3):
            stats_ref[row:row + 1, :] = jnp.sum(od_m[a] * od[b], axis=0, keepdims=True)
            row += 1


def _project2_kernel(m_ref, od_ref, out_ref):
    """out = M @ od for a (2, 3) SMEM matrix M and a (3, TR, 128) OD block."""
    od = od_ref[...]
    od0, od1, od2 = od[0], od[1], od[2]
    p0 = m_ref[0, 0] * od0 + m_ref[0, 1] * od1 + m_ref[0, 2] * od2
    p1 = m_ref[1, 0] * od0 + m_ref[1, 1] * od1 + m_ref[1, 2] * od2
    out_ref[0:1, :, :] = p0[None]   # full dense plane stores (no sublane masking)
    out_ref[1:2, :, :] = p1[None]


def _reconstruct_kernel(c_ref, s_ref, out_ref):
    """out = floor(min(Io * exp(-HERef @ (C * inv_scale)), 255)) / 255."""
    c = c_ref[...]
    c0 = c[0] * s_ref[0]
    c1 = c[1] * s_ref[1]
    inv255 = 1.0 / 255.0
    for ch in range(3):
        h0, h1 = _HEREF[ch]
        # exp kept in f32: bf16 EUP (v6e/v7x) can flip the floor() quantization.
        inorm = jnp.minimum(IO * jnp.exp(-(h0 * c0 + h1 * c1)), 255.0)
        # torchstain casts to int (truncation; values >= 0 so == floor) then /255
        out_ref[ch:ch + 1, :, :] = (jnp.floor(inorm) * inv255)[None]


# ---------------------------- pallas_call wrappers ---------------------------

def _call_od_stats(xp, tile_rows):
    c, rows, lanes = xp.shape
    grid_rows = rows // tile_rows
    return pl.pallas_call(
        _od_stats_kernel,
        grid=(grid_rows,),
        in_specs=[pl.BlockSpec((c, tile_rows, lanes), lambda i: (0, i, 0))],
        out_specs=(
            pl.BlockSpec((c, tile_rows, lanes), lambda i: (0, i, 0)),
            pl.BlockSpec((tile_rows, lanes), lambda i: (i, 0)),
            pl.BlockSpec((_NSTATS, lanes), lambda i: (i, 0)),
        ),
        out_shape=(
            jax.ShapeDtypeStruct((c, rows, lanes), jnp.float32),
            jax.ShapeDtypeStruct((rows, lanes), jnp.float32),
            jax.ShapeDtypeStruct((grid_rows * _NSTATS, lanes), jnp.float32),
        ),
        compiler_params=_CPARAMS,
    )(xp)


def _call_project2(mat, odp, tile_rows):
    c, rows, lanes = odp.shape
    grid_rows = rows // tile_rows
    return pl.pallas_call(
        _project2_kernel,
        grid=(grid_rows,),
        in_specs=[pl.BlockSpec(memory_space=pltpu.MemorySpace.SMEM),
                  pl.BlockSpec((c, tile_rows, lanes), lambda i: (0, i, 0))],
        out_specs=pl.BlockSpec((2, tile_rows, lanes), lambda i: (0, i, 0)),
        out_shape=jax.ShapeDtypeStruct((2, rows, lanes), jnp.float32),
        compiler_params=_CPARAMS,
    )(mat.astype(jnp.float32), odp)


def _call_reconstruct(concp, inv_scale, tile_rows):
    _, rows, lanes = concp.shape
    grid_rows = rows // tile_rows
    return pl.pallas_call(
        _reconstruct_kernel,
        grid=(grid_rows,),
        in_specs=[pl.BlockSpec((2, tile_rows, lanes), lambda i: (0, i, 0)),
                  pl.BlockSpec(memory_space=pltpu.MemorySpace.SMEM)],
        out_specs=pl.BlockSpec((3, tile_rows, lanes), lambda i: (0, i, 0)),
        out_shape=jax.ShapeDtypeStruct((3, rows, lanes), jnp.float32),
        compiler_params=_CPARAMS,
    )(concp, inv_scale.astype(jnp.float32))


# ------------------------------- forward pass --------------------------------

def _fix_eigvec_signs(v):
    # Canonical sign (largest-|component| positive) so the result does not depend
    # on the eigh library's arbitrary eigenvector sign convention.
    idx = jnp.argmax(jnp.abs(v), axis=0)
    dom = v[idx, jnp.arange(v.shape[1])]
    return v * jnp.where(dom < 0, -1.0, 1.0)[None, :]


@jax.jit
def macenko_normalize(x):
    """MacenkoNormalizer.forward for an RGB image x of shape (3, H, W) in [0, 1]."""
    c, h, w = x.shape
    npix = h * w
    tile_rows, grid_rows = _choose_tiling(npix)
    rows = tile_rows * grid_rows
    npad = rows * LANES

    xf = x.reshape(c, npix).astype(jnp.float32)
    # Pad with 1.0 (pure white): padded pixels fall below the OD threshold, so they
    # are excluded from the masked covariance / phi percentiles automatically; they
    # are sliced away before the concentration percentile and the final output.
    xpad = jnp.pad(xf, ((0, 0), (0, npad - npix)), constant_values=1.0)
    xp = xpad.reshape(c, rows, LANES)

    # 1) OD + transparent-pixel mask + fused masked-covariance partials (Pallas)
    od, mask, stats = _call_od_stats(xp, tile_rows)
    tot = stats.reshape(grid_rows, _NSTATS, LANES).sum(axis=(0, 2))
    n = tot[0]
    # TODO(synk): torchstain wraps normalize() in try/except (IndexError/_LinAlgError
    # -> return x unchanged); approximated here with a mask-count validity guard.
    valid = n >= 2.0
    n_safe = jnp.maximum(n, 2.0)
    s = tot[1:4]
    q = tot[4:10]
    qm = q[jnp.array([[0, 1, 2], [1, 3, 4], [2, 4, 5]])]
    cov = (qm - jnp.outer(s, s) / n_safe) / (n_safe - 1.0)
    cov = jnp.where(valid, cov, jnp.eye(3, dtype=jnp.float32))

    # 2) 3x3 eigh (tiny; left to XLA — no clean Pallas win)
    _, eigvecs = jnp.linalg.eigh(cov)                 # ascending eigenvalues
    eigvecs = _fix_eigvec_signs(eigvecs[:, 1:3])      # two largest

    # 3) project onto the eigen-plane (Pallas); angle percentiles via sort (XLA)
    that = _call_project2(eigvecs.T, od, tile_rows)   # (2, rows, 128) == That^T packed
    phi = jnp.arctan2(that[1].reshape(npad), that[0].reshape(npad))
    phi_sorted = jnp.sort(jnp.where(mask.reshape(npad) > 0.5, phi, jnp.float32(1e30)))
    # TODO(synk): replace the O(n log n) sorts (phi + 2 concentration channels) with a
    # streaming histogram / selection percentile for megapixel images.

    def _kth_masked(pct):                             # torchstain kthvalue percentile
        k = 1 + jnp.round(0.01 * pct * (n - 1.0)).astype(jnp.int32)
        return phi_sorted[jnp.clip(k, 1, npad) - 1]

    min_phi = _kth_masked(ALPHA)
    max_phi = _kth_masked(100.0 - ALPHA)
    v_min = eigvecs @ jnp.stack([jnp.cos(min_phi), jnp.sin(min_phi)])
    v_max = eigvecs @ jnp.stack([jnp.cos(max_phi), jnp.sin(max_phi)])
    he = jnp.where(v_min[0] > v_max[0],
                   jnp.stack([v_min, v_max], axis=1),
                   jnp.stack([v_max, v_min], axis=1))  # (3, 2) stain matrix

    # 4) concentrations: lstsq(HE, OD^T) == (HE^T HE)^{-1} HE^T OD (Pallas projection)
    pinv_he = jnp.linalg.solve(he.T @ he, he.T)        # (2, 3)
    conc = _call_project2(pinv_he, od, tile_rows)      # (2, rows, 128)
    conc_real = conc.reshape(2, npad)[:, :npix]        # drop padding pixels

    # 5) per-stain 99th percentile (torchstain kthvalue over all real pixels)
    def _kth_all(v, pct):
        k = 1 + int(round(0.01 * pct * (v.shape[0] - 1)))
        return jnp.sort(v)[k - 1]

    max_c = jnp.stack([_kth_all(conc_real[0], 99.0), _kth_all(conc_real[1], 99.0)])
    inv_scale = jnp.asarray(_MAXCREF, dtype=jnp.float32) / max_c   # 1 / (maxC / maxCRef)

    # 6) reconstruct the normalized RGB image (Pallas, per-pixel)
    out = _call_reconstruct(conc, inv_scale, tile_rows)
    out = out.reshape(c, npad)[:, :npix].reshape(c, h, w)
    return jnp.where(valid, out, xf.reshape(c, h, w))


# --------------------------- numpy reference (spec) ---------------------------

def _reference_normalize(x_np):
    """Pure-numpy re-implementation of torchstain Macenko normalize + forward wrapper."""
    he_ref = np.array(_HEREF, dtype=np.float32)
    max_c_ref = np.array(_MAXCREF, dtype=np.float32)
    c, h, w = x_np.shape
    I = (x_np.astype(np.float32) * 255.0).transpose(1, 2, 0).reshape(-1, c)
    OD = -np.log((I + 1.0) / IO)
    ODhat = OD[~np.any(OD < BETA, axis=1)]
    X = ODhat.T
    Xc = X - X.mean(axis=1, keepdims=True)
    cov = (Xc @ Xc.T) / (X.shape[1] - 1)
    _, eigvecs = np.linalg.eigh(cov)
    eigvecs = eigvecs[:, 1:3]
    idx = np.argmax(np.abs(eigvecs), axis=0)
    dom = eigvecs[idx, np.arange(2)]
    eigvecs = (eigvecs * np.where(dom < 0, -1.0, 1.0)[None, :]).astype(np.float32)
    That = ODhat @ eigvecs
    phi = np.arctan2(That[:, 1], That[:, 0])

    def kth(t, q):
        k = 1 + int(round(0.01 * q * (t.size - 1)))
        return np.sort(t)[k - 1]

    min_phi = kth(phi, ALPHA)
    max_phi = kth(phi, 100.0 - ALPHA)
    v_min = eigvecs @ np.array([np.cos(min_phi), np.sin(min_phi)], dtype=np.float32)
    v_max = eigvecs @ np.array([np.cos(max_phi), np.sin(max_phi)], dtype=np.float32)
    if v_min[0] > v_max[0]:
        HE = np.stack([v_min, v_max], axis=1)
    else:
        HE = np.stack([v_max, v_min], axis=1)
    C = np.linalg.lstsq(HE, OD.T, rcond=None)[0]               # (2, Npix)
    maxC = np.array([kth(C[0], 99.0), kth(C[1], 99.0)]) / max_c_ref
    C2 = C / maxC[:, None]
    Inorm = np.minimum(IO * np.exp(-(he_ref @ C2)), 255.0)
    y = np.floor(Inorm).T.reshape(h, w, c) / 255.0             # .int() then /255, HWC
    return y.transpose(2, 0, 1).astype(np.float32)             # back to CHW


# ------------------------------------ main ------------------------------------

if __name__ == "__main__":
    key = jax.random.PRNGKey(0)
    C, H, W = 3, 16, 16   # RGB required by the stain model
    x = jax.random.uniform(key, (C, H, W), dtype=jnp.float32, minval=0.05, maxval=0.95)

    out = jax.block_until_ready(macenko_normalize(x))
    assert out.shape == (C, H, W)

    x_np = np.asarray(x)
    npix = H * W
    tile_rows, grid_rows = _choose_tiling(npix)
    rows = tile_rows * grid_rows
    xf_np = x_np.reshape(C, npix).astype(np.float32)
    xp_np = xf_np.reshape(C, rows, LANES)        # no padding needed at 16x16

    # Unit checks: each Pallas kernel vs a plain-numpy equivalent.
    od_p, mask_p, stats_p = _call_od_stats(jnp.asarray(xp_np), tile_rows)
    od_np = np.asarray(od_p).reshape(C, npix)
    mask_np = np.asarray(mask_p).reshape(npix)
    np.testing.assert_allclose(od_np, -np.log((xf_np * 255.0 + 1.0) / IO),
                               rtol=1e-5, atol=1e-5)
    np.testing.assert_array_equal(
        mask_np, np.all(od_np >= BETA, axis=0).astype(np.float32))

    tot = np.asarray(stats_p).reshape(grid_rows, _NSTATS, LANES).sum(axis=(0, 2))
    ref_n = mask_np.sum()
    ref_s = (od_np * mask_np[None, :]).sum(axis=1)
    ref_q = np.array([np.sum(mask_np * od_np[a] * od_np[b])
                      for a in range(3) for b in range(a, 3)])
    np.testing.assert_allclose(tot[0], ref_n, rtol=1e-5)
    np.testing.assert_allclose(tot[1:4], ref_s, rtol=1e-4, atol=1e-3)
    np.testing.assert_allclose(tot[4:10], ref_q, rtol=1e-4, atol=1e-3)

    m_test = np.array([[0.25, -0.5, 0.75], [1.0, 0.5, -0.25]], dtype=np.float32)
    proj_p = _call_project2(jnp.asarray(m_test), od_p, tile_rows)
    proj_np = np.asarray(proj_p).reshape(2, npix)
    np.testing.assert_allclose(proj_np, m_test @ od_np, rtol=1e-4, atol=1e-4)

    s_test = np.array([0.8, 1.25], dtype=np.float32)
    rec_p = _call_reconstruct(proj_p, jnp.asarray(s_test), tile_rows)
    rec_np = np.asarray(rec_p).reshape(3, npix)
    he_np = np.array(_HEREF, dtype=np.float32)
    rec_ref = np.floor(np.minimum(
        IO * np.exp(-(he_np @ (proj_np * s_test[:, None]))), 255.0)) / 255.0
    # floor() quantization may flip one level where exp() differs in the last ulp
    np.testing.assert_allclose(rec_np, rec_ref, rtol=0, atol=1.0 / 255.0 + 1e-5)

    # End-to-end check against the numpy torchstain reference (tolerant of the
    # +/- one quantization step the .int() cast can introduce between fp paths).
    ref = _reference_normalize(x_np)
    np.testing.assert_allclose(np.asarray(out), ref, rtol=0, atol=2.0 / 255.0)

    print("KERNEL_OK")
</pallas_src>

<mosaic_0001>
module attributes {stable_mosaic.version = 11 : i64} {
  func.func @_od_stats_kernel(%arg0: i32, %arg1: memref<3x2x128xf32, #tpu.memory_space<vmem>>, %arg2: memref<3x2x128xf32, #tpu.memory_space<vmem>>, %arg3: memref<2x128xf32, #tpu.memory_space<vmem>>, %arg4: memref<16x128xf32, #tpu.memory_space<vmem>>) attributes {dimension_semantics = [#tpu.dimension_semantics<parallel>], iteration_bounds = array<i64: 1>, scalar_prefetch = 0 : i64, scratch_operands = 0 : i64, tpu.core_type = #tpu.core_type<tc>, window_params = [{transform_indices = @transform_0, window_bounds = array<i64: 3, 2, 128>}, {transform_indices = @transform_1, window_bounds = array<i64: 3, 2, 128>}, {transform_indices = @transform_2, window_bounds = array<i64: 2, 128>}, {transform_indices = @transform_3, window_bounds = array<i64: 16, 128>}]} {
    %c0 = arith.constant 0 : index
    %c0_0 = arith.constant 0 : index
    %c0_1 = arith.constant 0 : index
    %0 = vector.load %arg1[%c0, %c0_0, %c0_1] : memref<3x2x128xf32, #tpu.memory_space<vmem>>, vector<3x2x128xf32>
    %cst = arith.constant 2.550000e+02 : f32
    %1 = vector.broadcast %cst : f32 to vector<3x2x128xf32>
    %2 = arith.mulf %0, %1 : vector<3x2x128xf32>
    %cst_2 = arith.constant 1.000000e+00 : f32
    %3 = vector.broadcast %cst_2 : f32 to vector<3x2x128xf32>
    %4 = arith.addf %2, %3 : vector<3x2x128xf32>
    %cst_3 = arith.constant 0.00416666688 : f32
    %5 = vector.broadcast %cst_3 : f32 to vector<3x2x128xf32>
    %6 = arith.mulf %4, %5 : vector<3x2x128xf32>
    %7 = math.log %6 : vector<3x2x128xf32>
    %cst_4 = arith.constant 0.000000e+00 : f32
    %8 = vector.broadcast %cst_4 : f32 to vector<3x2x128xf32>
    %9 = arith.subf %8, %7 : vector<3x2x128xf32>
    %c0_5 = arith.constant 0 : index
    %c0_6 = arith.constant 0 : index
    %c0_7 = arith.constant 0 : index
    %10 = vector.load %arg2[%c0_5, %c0_6, %c0_7] : memref<3x2x128xf32, #tpu.memory_space<vmem>>, vector<3x2x128xf32>
    tpu.vector_store %arg2[%c0_5, %c0_6, %c0_7], %9 {strides = array<i32>} : memref<3x2x128xf32, #tpu.memory_space<vmem>>, vector<3x2x128xf32>,
    %11 = vector.extract_strided_slice %9 {offsets = [0, 0, 0], sizes = [1, 2, 128], strides = [1, 1, 1]} : vector<3x2x128xf32> to vector<1x2x128xf32>
    %12 = vector.shape_cast %11 : vector<1x2x128xf32> to vector<2x128xf32>
    %cst_8 = arith.constant 1.500000e-01 : f32
    %13 = vector.broadcast %cst_8 : f32 to vector<2x128xf32>
    %14 = arith.cmpf oge, %12, %13 : vector<2x128xf32>
    %15 = vector.extract_strided_slice %9 {offsets = [1, 0, 0], sizes = [1, 2, 128], strides = [1, 1, 1]} : vector<3x2x128xf32> to vector<1x2x128xf32>
    %16 = vector.shape_cast %15 : vector<1x2x128xf32> to vector<2x128xf32>
    %cst_9 = arith.constant 1.500000e-01 : f32
    %17 = vector.broadcast %cst_9 : f32 to vector<2x128xf32>
    %18 = arith.cmpf oge, %16, %17 : vector<2x128xf32>
    %19 = arith.andi %14, %18 : vector<2x128xi1>
    %20 = vector.extract_strided_slice %9 {offsets = [2, 0, 0], sizes = [1, 2, 128], strides = [1, 1, 1]} : vector<3x2x128xf32> to vector<1x2x128xf32>
    %21 = vector.shape_cast %20 : vector<1x2x128xf32> to vector<2x128xf32>
    %cst_10 = arith.constant 1.500000e-01 : f32
    %22 = vector.broadcast %cst_10 : f32 to vector<2x128xf32>
    %23 = arith.cmpf oge, %21, %22 : vector<2x128xf32>
    %24 = arith.andi %19, %23 : vector<2x128xi1>
    %25 = arith.extui %24 : vector<2x128xi1> to vector<2x128xi32>
    %26 = arith.sitofp %25 : vector<2x128xi32> to vector<2x128xf32>
    %c0_11 = arith.constant 0 : index
    %c0_12 = arith.constant 0 : index
    %27 = vector.load %arg3[%c0_11, %c0_12] : memref<2x128xf32, #tpu.memory_space<vmem>>, vector<2x128xf32>
    tpu.vector_store %arg3[%c0_11, %c0_12], %26 {strides = array<i32>} : memref<2x128xf32, #tpu.memory_space<vmem>>, vector<2x128xf32>,
    %28 = vector.shape_cast %26 : vector<2x128xf32> to vector<1x2x128xf32>
    %29 = vector.broadcast %28 : vector<1x2x128xf32> to vector<3x2x128xf32>
    %30 = arith.mulf %9, %29 : vector<3x2x128xf32>
    %cst_13 = arith.constant 0.000000e+00 : f32
    %31 = vector.broadcast %cst_13 : f32 to vector<16x128xf32>
    %c0_14 = arith.constant 0 : index
    %c0_15 = arith.constant 0 : index
    %32 = vector.load %arg4[%c0_14, %c0_15] : memref<16x128xf32, #tpu.memory_space<vmem>>, vector<16x128xf32>
    tpu.vector_store %arg4[%c0_14, %c0_15], %31 {strides = array<i32>} : memref<16x128xf32, #tpu.memory_space<vmem>>, vector<16x128xf32>,
    %cst_16 = arith.constant dense<0.000000e+00> : vector<128xf32>
    %33 = vector.multi_reduction <add>, %26, %cst_16 [0] : vector<2x128xf32> to vector<128xf32>
    %34 = vector.shape_cast %33 : vector<128xf32> to vector<1x128xf32>
    %c0_17 = arith.constant 0 : index
    %c0_18 = arith.constant 0 : index
    %35 = vector.load %arg4[%c0_17, %c0_18] : memref<16x128xf32, #tpu.memory_space<vmem>>, vector<1x128xf32>
    tpu.vector_store %arg4[%c0_17, %c0_18], %34 {strides = array<i32>} : memref<16x128xf32, #tpu.memory_space<vmem>>, vector<1x128xf32>,
    %36 = vector.extract_strided_slice %30 {offsets = [0, 0, 0], sizes = [1, 2, 128], strides = [1, 1, 1]} : vector<3x2x128xf32> to vector<1x2x128xf32>
    %37 = vector.shape_cast %36 : vector<1x2x128xf32> to vector<2x128xf32>
    %cst_19 = arith.constant dense<0.000000e+00> : vector<128xf32>
    %38 = vector.multi_reduction <add>, %37, %cst_19 [0] : vector<2x128xf32> to vector<128xf32>
    %39 = vector.shape_cast %38 : vector<128xf32> to vector<1x128xf32>
    %c1 = arith.constant 1 : index
    %c0_20 = arith.constant 0 : index
    %40 = vector.load %arg4[%c1, %c0_20] : memref<16x128xf32, #tpu.memory_space<vmem>>, vector<1x128xf32>
    tpu.vector_store %arg4[%c1, %c0_20], %39 {strides = array<i32>} : memref<16x128xf32, #tpu.memory_space<vmem>>, vector<1x128xf32>,
    %41 = vector.extract_strided_slice %30 {offsets = [1, 0, 0], sizes = [1, 2, 128], strides = [1, 1, 1]} : vector<3x2x128xf32> to vector<1x2x128xf32>
    %42 = vector.shape_cast %41 : vector<1x2x128xf32> to vector<2x128xf32>
    %cst_21 = arith.constant dense<0.000000e+00> : vector<128xf32>
    %43 = vector.multi_reduction <add>, %42, %cst_21 [0] : vector<2x128xf32> to vector<128xf32>
    %44 = vector.shape_cast %43 : vector<128xf32> to vector<1x128xf32>
    %c2 = arith.constant 2 : index
    %c0_22 = arith.constant 0 : index
    %45 = vector.load %arg4[%c2, %c0_22] : memref<16x128xf32, #tpu.memory_space<vmem>>, vector<1x128xf32>
    tpu.vector_store %arg4[%c2, %c0_22], %44 {strides = array<i32>} : memref<16x128xf32, #tpu.memory_space<vmem>>, vector<1x128xf32>,
    %46 = vector.extract_strided_slice %30 {offsets = [2, 0, 0], sizes = [1, 2, 128], strides = [1, 1, 1]} : vector<3x2x128xf32> to vector<1x2x128xf32>
    %47 = vector.shape_cast %46 : vector<1x2x128xf32> to vector<2x128xf32>
    %cst_23 = arith.constant dense<0.000000e+00> : vector<128xf32>
    %48 = vector.multi_reduction <add>, %47, %cst_23 [0] : vector<2x128xf32> to vector<128xf32>
    %49 = vector.shape_cast %48 : vector<128xf32> to vector<1x128xf32>
    %c3 = arith.constant 3 : index
    %c0_24 = arith.constant 0 : index
    %50 = vector.load %arg4[%c3, %c0_24] : memref<16x128xf32, #tpu.memory_space<vmem>>, vector<1x128xf32>
    tpu.vector_store %arg4[%c3, %c0_24], %49 {strides = array<i32>} : memref<16x128xf32, #tpu.memory_space<vmem>>, vector<1x128xf32>,
    %51 = vector.extract_strided_slice %30 {offsets = [0, 0, 0], sizes = [1, 2, 128], strides = [1, 1, 1]} : vector<3x2x128xf32> to vector<1x2x128xf32>
    %52 = vector.shape_cast %51 : vector<1x2x128xf32> to vector<2x128xf32>
    %53 = vector.extract_strided_slice %9 {offsets = [0, 0, 0], sizes = [1, 2, 128], strides = [1, 1, 1]} : vector<3x2x128xf32> to vector<1x2x128xf32>
    %54 = vector.shape_cast %53 : vector<1x2x128xf32> to vector<2x128xf32>
    %55 = arith.mulf %52, %54 : vector<2x128xf32>
    %cst_25 = arith.constant dense<0.000000e+00> : vector<128xf32>
    %56 = vector.multi_reduction <add>, %55, %cst_25 [0] : vector<2x128xf32> to vector<128xf32>
    %57 = vector.shape_cast %56 : vector<128xf32> to vector<1x128xf32>
    %c4 = arith.constant 4 : index
    %c0_26 = arith.constant 0 : index
    %58 = vector.load %arg4[%c4, %c0_26] : memref<16x128xf32, #tpu.memory_space<vmem>>, vector<1x128xf32>
    tpu.vector_store %arg4[%c4, %c0_26], %57 {strides = array<i32>} : memref<16x128xf32, #tpu.memory_space<vmem>>, vector<1x128xf32>,
    %59 = vector.extract_strided_slice %30 {offsets = [0, 0, 0], sizes = [1, 2, 128], strides = [1, 1, 1]} : vector<3x2x128xf32> to vector<1x2x128xf32>
    %60 = vector.shape_cast %59 : vector<1x2x128xf32> to vector<2x128xf32>
    %61 = vector.extract_strided_slice %9 {offsets = [1, 0, 0], sizes = [1, 2, 128], strides = [1, 1, 1]} : vector<3x2x128xf32> to vector<1x2x128xf32>
    %62 = vector.shape_cast %61 : vector<1x2x128xf32> to vector<2x128xf32>
    %63 = arith.mulf %60, %62 : vector<2x128xf32>
    %cst_27 = arith.constant dense<0.000000e+00> : vector<128xf32>
    %64 = vector.multi_reduction <add>, %63, %cst_27 [0] : vector<2x128xf32> to vector<128xf32>
    %65 = vector.shape_cast %64 : vector<128xf32> to vector<1x128xf32>
    %c5 = arith.constant 5 : index
    %c0_28 = arith.constant 0 : index
    %66 = vector.load %arg4[%c5, %c0_28] : memref<16x128xf32, #tpu.memory_space<vmem>>, vector<1x128xf32>
    tpu.vector_store %arg4[%c5, %c0_28], %65 {strides = array<i32>} : memref<16x128xf32, #tpu.memory_space<vmem>>, vector<1x128xf32>,
    %67 = vector.extract_strided_slice %30 {offsets = [0, 0, 0], sizes = [1, 2, 128], strides = [1, 1, 1]} : vector<3x2x128xf32> to vector<1x2x128xf32>
    %68 = vector.shape_cast %67 : vector<1x2x128xf32> to vector<2x128xf32>
    %69 = vector.extract_strided_slice %9 {offsets = [2, 0, 0], sizes = [1, 2, 128], strides = [1, 1, 1]} : vector<3x2x128xf32> to vector<1x2x128xf32>
    %70 = vector.shape_cast %69 : vector<1x2x128xf32> to vector<2x128xf32>
    %71 = arith.mulf %68, %70 : vector<2x128xf32>
    %cst_29 = arith.constant dense<0.000000e+00> : vector<128xf32>
    %72 = vector.multi_reduction <add>, %71, %cst_29 [0] : vector<2x128xf32> to vector<128xf32>
    %73 = vector.shape_cast %72 : vector<128xf32> to vector<1x128xf32>
    %c6 = arith.constant 6 : index
    %c0_30 = arith.constant 0 : index
    %74 = vector.load %arg4[%c6, %c0_30] : memref<16x128xf32, #tpu.memory_space<vmem>>, vector<1x128xf32>
    tpu.vector_store %arg4[%c6, %c0_30], %73 {strides = array<i32>} : memref<16x128xf32, #tpu.memory_space<vmem>>, vector<1x128xf32>,
    %75 = vector.extract_strided_slice %30 {offsets = [1, 0, 0], sizes = [1, 2, 128], strides = [1, 1, 1]} : vector<3x2x128xf32> to vector<1x2x128xf32>
    %76 = vector.shape_cast %75 : vector<1x2x128xf32> to vector<2x128xf32>
    %77 = vector.extract_strided_slice %9 {offsets = [1, 0, 0], sizes = [1, 2, 128], strides = [1, 1, 1]} : vector<3x2x128xf32> to vector<1x2x128xf32>
    %78 = vector.shape_cast %77 : vector<1x2x128xf32> to vector<2x128xf32>
    %79 = arith.mulf %76, %78 : vector<2x128xf32>
    %cst_31 = arith.constant dense<0.000000e+00> : vector<128xf32>
    %80 = vector.multi_reduction <add>, %79, %cst_31 [0] : vector<2x128xf32> to vector<128xf32>
    %81 = vector.shape_cast %80 : vector<128xf32> to vector<1x128xf32>
    %c7 = arith.constant 7 : index
    %c0_32 = arith.constant 0 : index
    %82 = vector.load %arg4[%c7, %c0_32] : memref<16x128xf32, #tpu.memory_space<vmem>>, vector<1x128xf32>
    tpu.vector_store %arg4[%c7, %c0_32], %81 {strides = array<i32>} : memref<16x128xf32, #tpu.memory_space<vmem>>, vector<1x128xf32>,
    %83 = vector.extract_strided_slice %30 {offsets = [1, 0, 0], sizes = [1, 2, 128], strides = [1, 1, 1]} : vector<3x2x128xf32> to vector<1x2x128xf32>
    %84 = vector.shape_cast %83 : vector<1x2x128xf32> to vector<2x128xf32>
    %85 = vector.extract_strided_slice %9 {offsets = [2, 0, 0], sizes = [1, 2, 128], strides = [1, 1, 1]} : vector<3x2x128xf32> to vector<1x2x128xf32>
    %86 = vector.shape_cast %85 : vector<1x2x128xf32> to vector<2x128xf32>
    %87 = arith.mulf %84, %86 : vector<2x128xf32>
    %cst_33 = arith.constant dense<0.000000e+00> : vector<128xf32>
    %88 = vector.multi_reduction <add>, %87, %cst_33 [0] : vector<2x128xf32> to vector<128xf32>
    %89 = vector.shape_cast %88 : vector<128xf32> to vector<1x128xf32>
    %c8 = arith.constant 8 : index
    %c0_34 = arith.constant 0 : index
    %90 = vector.load %arg4[%c8, %c0_34] : memref<16x128xf32, #tpu.memory_space<vmem>>, vector<1x128xf32>
    tpu.vector_store %arg4[%c8, %c0_34], %89 {strides = array<i32>} : memref<16x128xf32, #tpu.memory_space<vmem>>, vector<1x128xf32>,
    %91 = vector.extract_strided_slice %30 {offsets = [2, 0, 0], sizes = [1, 2, 128], strides = [1, 1, 1]} : vector<3x2x128xf32> to vector<1x2x128xf32>
    %92 = vector.shape_cast %91 : vector<1x2x128xf32> to vector<2x128xf32>
    %93 = vector.extract_strided_slice %9 {offsets = [2, 0, 0], sizes = [1, 2, 128], strides = [1, 1, 1]} : vector<3x2x128xf32> to vector<1x2x128xf32>
    %94 = vector.shape_cast %93 : vector<1x2x128xf32> to vector<2x128xf32>
    %95 = arith.mulf %92, %94 : vector<2x128xf32>
    %cst_35 = arith.constant dense<0.000000e+00> : vector<128xf32>
    %96 = vector.multi_reduction <add>, %95, %cst_35 [0] : vector<2x128xf32> to vector<128xf32>
    %97 = vector.shape_cast %96 : vector<128xf32> to vector<1x128xf32>
    %c9 = arith.constant 9 : index
    %c0_36 = arith.constant 0 : index
    %98 = vector.load %arg4[%c9, %c0_36] : memref<16x128xf32, #tpu.memory_space<vmem>>, vector<1x128xf32>
    tpu.vector_store %arg4[%c9, %c0_36], %97 {strides = array<i32>} : memref<16x128xf32, #tpu.memory_space<vmem>>, vector<1x128xf32>,
    return
  }
  func.func @transform_0(%arg0: i32) -> (i32, i32, i32) {
    %c0_i32 = arith.constant 0 : i32
    %c0_i32_0 = arith.constant 0 : i32
    %c0_i32_1 = arith.constant 0 : i32
    return %c0_i32, %arg0, %c0_i32_0 : i32, i32, i32
  }
  func.func @transform_1(%arg0: i32) -> (i32, i32, i32) {
    %c0_i32 = arith.constant 0 : i32
    %c0_i32_0 = arith.constant 0 : i32
    %c0_i32_1 = arith.constant 0 : i32
    return %c0_i32, %arg0, %c0_i32_0 : i32, i32, i32
  }
  func.func @transform_2(%arg0: i32) -> (i32, i32) {
    %c0_i32 = arith.constant 0 : i32
    %c0_i32_0 = arith.constant 0 : i32
    return %arg0, %c0_i32 : i32, i32
  }
  func.func @transform_3(%arg0: i32) -> (i32, i32) {
    %c0_i32 = arith.constant 0 : i32
    %c0_i32_0 = arith.constant 0 : i32
    return %arg0, %c0_i32 : i32, i32
  }
}

module attributes {stable_mosaic.version = 11 : i64} {
  func.func @_project2_kernel(%arg0: i32, %arg1: memref<2x3xf32, #tpu.memory_space<smem>>, %arg2: memref<3x2x128xf32, #tpu.memory_space<vmem>>, %arg3: memref<2x2x128xf32, #tpu.memory_space<vmem>>) attributes {dimension_semantics = [#tpu.dimension_semantics<parallel>], iteration_bounds = array<i64: 1>, scalar_prefetch = 0 : i64, scratch_operands = 0 : i64, tpu.core_type = #tpu.core_type<tc>, window_params = [{transform_indices = @transform_0, window_bounds = array<i64: 2, 3>}, {transform_indices = @transform_1, window_bounds = array<i64: 3, 2, 128>}, {transform_indices = @transform_2, window_bounds = array<i64: 2, 2, 128>}]} {
    %c0 = arith.constant 0 : index
    %c0_0 = arith.constant 0 : index
    %c0_1 = arith.constant 0 : index
    %0 = vector.load %arg2[%c0, %c0_0, %c0_1] : memref<3x2x128xf32, #tpu.memory_space<vmem>>, vector<3x2x128xf32>
    %1 = vector.extract_strided_slice %0 {offsets = [0, 0, 0], sizes = [1, 2, 128], strides = [1, 1, 1]} : vector<3x2x128xf32> to vector<1x2x128xf32>
    %2 = vector.shape_cast %1 : vector<1x2x128xf32> to vector<2x128xf32>
    %3 = vector.extract_strided_slice %0 {offsets = [1, 0, 0], sizes = [1, 2, 128], strides = [1, 1, 1]} : vector<3x2x128xf32> to vector<1x2x128xf32>
    %4 = vector.shape_cast %3 : vector<1x2x128xf32> to vector<2x128xf32>
    %5 = vector.extract_strided_slice %0 {offsets = [2, 0, 0], sizes = [1, 2, 128], strides = [1, 1, 1]} : vector<3x2x128xf32> to vector<1x2x128xf32>
    %6 = vector.shape_cast %5 : vector<1x2x128xf32> to vector<2x128xf32>
    %c0_2 = arith.constant 0 : index
    %c0_3 = arith.constant 0 : index
    %7 = memref.load %arg1[%c0_2, %c0_3] : memref<2x3xf32, #tpu.memory_space<smem>>
    %8 = vector.broadcast %7 : f32 to vector<2x128xf32>
    %9 = arith.mulf %8, %2 : vector<2x128xf32>
    %c0_4 = arith.constant 0 : index
    %c1 = arith.constant 1 : index
    %10 = memref.load %arg1[%c0_4, %c1] : memref<2x3xf32, #tpu.memory_space<smem>>
    %11 = vector.broadcast %10 : f32 to vector<2x128xf32>
    %12 = arith.mulf %11, %4 : vector<2x128xf32>
    %13 = arith.addf %9, %12 : vector<2x128xf32>
    %c0_5 = arith.constant 0 : index
    %c2 = arith.constant 2 : index
    %14 = memref.load %arg1[%c0_5, %c2] : memref<2x3xf32, #tpu.memory_space<smem>>
    %15 = vector.broadcast %14 : f32 to vector<2x128xf32>
    %16 = arith.mulf %15, %6 : vector<2x128xf32>
    %17 = arith.addf %13, %16 : vector<2x128xf32>
    %c1_6 = arith.constant 1 : index
    %c0_7 = arith.constant 0 : index
    %18 = memref.load %arg1[%c1_6, %c0_7] : memref<2x3xf32, #tpu.memory_space<smem>>
    %19 = vector.broadcast %18 : f32 to vector<2x128xf32>
    %20 = arith.mulf %19, %2 : vector<2x128xf32>
    %c1_8 = arith.constant 1 : index
    %c1_9 = arith.constant 1 : index
    %21 = memref.load %arg1[%c1_8, %c1_9] : memref<2x3xf32, #tpu.memory_space<smem>>
    %22 = vector.broadcast %21 : f32 to vector<2x128xf32>
    %23 = arith.mulf %22, %4 : vector<2x128xf32>
    %24 = arith.addf %20, %23 : vector<2x128xf32>
    %c1_10 = arith.constant 1 : index
    %c2_11 = arith.constant 2 : index
    %25 = memref.load %arg1[%c1_10, %c2_11] : memref<2x3xf32, #tpu.memory_space<smem>>
    %26 = vector.broadcast %25 : f32 to vector<2x128xf32>
    %27 = arith.mulf %26, %6 : vector<2x128xf32>
    %28 = arith.addf %24, %27 : vector<2x128xf32>
    %29 = vector.shape_cast %17 : vector<2x128xf32> to vector<1x2x128xf32>
    %c0_12 = arith.constant 0 : index
    %c0_13 = arith.constant 0 : index
    %c0_14 = arith.constant 0 : index
    %30 = vector.load %arg3[%c0_12, %c0_13, %c0_14] : memref<2x2x128xf32, #tpu.memory_space<vmem>>, vector<1x2x128xf32>
    tpu.vector_store %arg3[%c0_12, %c0_13, %c0_14], %29 {strides = array<i32>} : memref<2x2x128xf32, #tpu.memory_space<vmem>>, vector<1x2x128xf32>,
    %31 = vector.shape_cast %28 : vector<2x128xf32> to vector<1x2x128xf32>
    %c1_15 = arith.constant 1 : index
    %c0_16 = arith.constant 0 : index
    %c0_17 = arith.constant 0 : index
    %32 = vector.load %arg3[%c1_15, %c0_16, %c0_17] : memref<2x2x128xf32, #tpu.memory_space<vmem>>, vector<1x2x128xf32>
    tpu.vector_store %arg3[%c1_15, %c0_16, %c0_17], %31 {strides = array<i32>} : memref<2x2x128xf32, #tpu.memory_space<vmem>>, vector<1x2x128xf32>,
    return
  }
  func.func @transform_0(%arg0: i32) -> (i32, i32) {
    %c0_i32 = arith.constant 0 : i32
    %c0_i32_0 = arith.constant 0 : i32
    %c0_i32_1 = arith.constant 0 : i32
    return %c0_i32, %c0_i32_0 : i32, i32
  }
  func.func @transform_1(%arg0: i32) -> (i32, i32, i32) {
    %c0_i32 = arith.constant 0 : i32
    %c0_i32_0 = arith.constant 0 : i32
    %c0_i32_1 = arith.constant 0 : i32
    return %c0_i32, %arg0, %c0_i32_0 : i32, i32, i32
  }
  func.func @transform_2(%arg0: i32) -> (i32, i32, i32) {
    %c0_i32 = arith.constant 0 : i32
    %c0_i32_0 = arith.constant 0 : i32
    %c0_i32_1 = arith.constant 0 : i32
    return %c0_i32, %arg0, %c0_i32_0 : i32, i32, i32
  }
}

module attributes {stable_mosaic.version = 11 : i64} {
  func.func @_reconstruct_kernel(%arg0: i32, %arg1: memref<2x2x128xf32, #tpu.memory_space<vmem>>, %arg2: memref<2xf32, #tpu.memory_space<smem>>, %arg3: memref<3x2x128xf32, #tpu.memory_space<vmem>>) attributes {dimension_semantics = [#tpu.dimension_semantics<parallel>], iteration_bounds = array<i64: 1>, scalar_prefetch = 0 : i64, scratch_operands = 0 : i64, tpu.core_type = #tpu.core_type<tc>, window_params = [{transform_indices = @transform_0, window_bounds = array<i64: 2, 2, 128>}, {transform_indices = @transform_1, window_bounds = array<i64: 2>}, {transform_indices = @transform_2, window_bounds = array<i64: 3, 2, 128>}]} {
    %c0 = arith.constant 0 : index
    %c0_0 = arith.constant 0 : index
    %c0_1 = arith.constant 0 : index
    %0 = vector.load %arg1[%c0, %c0_0, %c0_1] : memref<2x2x128xf32, #tpu.memory_space<vmem>>, vector<2x2x128xf32>
    %1 = vector.extract_strided_slice %0 {offsets = [0, 0, 0], sizes = [1, 2, 128], strides = [1, 1, 1]} : vector<2x2x128xf32> to vector<1x2x128xf32>
    %2 = vector.shape_cast %1 : vector<1x2x128xf32> to vector<2x128xf32>
    %c0_2 = arith.constant 0 : index
    %3 = memref.load %arg2[%c0_2] : memref<2xf32, #tpu.memory_space<smem>>
    %4 = vector.broadcast %3 : f32 to vector<2x128xf32>
    %5 = arith.mulf %2, %4 : vector<2x128xf32>
    %6 = vector.extract_strided_slice %0 {offsets = [1, 0, 0], sizes = [1, 2, 128], strides = [1, 1, 1]} : vector<2x2x128xf32> to vector<1x2x128xf32>
    %7 = vector.shape_cast %6 : vector<1x2x128xf32> to vector<2x128xf32>
    %c1 = arith.constant 1 : index
    %8 = memref.load %arg2[%c1] : memref<2xf32, #tpu.memory_space<smem>>
    %9 = vector.broadcast %8 : f32 to vector<2x128xf32>
    %10 = arith.mulf %7, %9 : vector<2x128xf32>
    %cst = arith.constant 5.626000e-01 : f32
    %11 = vector.broadcast %cst : f32 to vector<2x128xf32>
    %12 = arith.mulf %11, %5 : vector<2x128xf32>
    %cst_3 = arith.constant 2.159000e-01 : f32
    %13 = vector.broadcast %cst_3 : f32 to vector<2x128xf32>
    %14 = arith.mulf %13, %10 : vector<2x128xf32>
    %15 = arith.addf %12, %14 : vector<2x128xf32>
    %cst_4 = arith.constant 0.000000e+00 : f32
    %16 = vector.broadcast %cst_4 : f32 to vector<2x128xf32>
    %17 = arith.subf %16, %15 : vector<2x128xf32>
    %18 = math.exp %17 : vector<2x128xf32>
    %cst_5 = arith.constant 2.400000e+02 : f32
    %19 = vector.broadcast %cst_5 : f32 to vector<2x128xf32>
    %20 = arith.mulf %19, %18 : vector<2x128xf32>
    %cst_6 = arith.constant 2.550000e+02 : f32
    %21 = vector.broadcast %cst_6 : f32 to vector<2x128xf32>
    %22 = arith.minimumf %20, %21 : vector<2x128xf32>
    %23 = math.floor %22 : vector<2x128xf32>
    %cst_7 = arith.constant 0.00392156886 : f32
    %24 = vector.broadcast %cst_7 : f32 to vector<2x128xf32>
    %25 = arith.mulf %23, %24 : vector<2x128xf32>
    %26 = vector.shape_cast %25 : vector<2x128xf32> to vector<1x2x128xf32>
    %c0_8 = arith.constant 0 : index
    %c0_9 = arith.constant 0 : index
    %c0_10 = arith.constant 0 : index
    %27 = vector.load %arg3[%c0_8, %c0_9, %c0_10] : memref<3x2x128xf32, #tpu.memory_space<vmem>>, vector<1x2x128xf32>
    tpu.vector_store %arg3[%c0_8, %c0_9, %c0_10], %26 {strides = array<i32>} : memref<3x2x128xf32, #tpu.memory_space<vmem>>, vector<1x2x128xf32>,
    %cst_11 = arith.constant 0.720099985 : f32
    %28 = vector.broadcast %cst_11 : f32 to vector<2x128xf32>
    %29 = arith.mulf %28, %5 : vector<2x128xf32>
    %cst_12 = arith.constant 0.801199972 : f32
    %30 = vector.broadcast %cst_12 : f32 to vector<2x128xf32>
    %31 = arith.mulf %30, %10 : vector<2x128xf32>
    %32 = arith.addf %29, %31 : vector<2x128xf32>
    %cst_13 = arith.constant 0.000000e+00 : f32
    %33 = vector.broadcast %cst_13 : f32 to vector<2x128xf32>
    %34 = arith.subf %33, %32 : vector<2x128xf32>
    %35 = math.exp %34 : vector<2x128xf32>
    %cst_14 = arith.constant 2.400000e+02 : f32
    %36 = vector.broadcast %cst_14 : f32 to vector<2x128xf32>
    %37 = arith.mulf %36, %35 : vector<2x128xf32>
    %cst_15 = arith.constant 2.550000e+02 : f32
    %38 = vector.broadcast %cst_15 : f32 to vector<2x128xf32>
    %39 = arith.minimumf %37, %38 : vector<2x128xf32>
    %40 = math.floor %39 : vector<2x128xf32>
    %cst_16 = arith.constant 0.00392156886 : f32
    %41 = vector.broadcast %cst_16 : f32 to vector<2x128xf32>
    %42 = arith.mulf %40, %41 : vector<2x128xf32>
    %43 = vector.shape_cast %42 : vector<2x128xf32> to vector<1x2x128xf32>
    %c1_17 = arith.constant 1 : index
    %c0_18 = arith.constant 0 : index
    %c0_19 = arith.constant 0 : index
    %44 = vector.load %arg3[%c1_17, %c0_18, %c0_19] : memref<3x2x128xf32, #tpu.memory_space<vmem>>, vector<1x2x128xf32>
    tpu.vector_store %arg3[%c1_17, %c0_18, %c0_19], %43 {strides = array<i32>} : memref<3x2x128xf32, #tpu.memory_space<vmem>>, vector<1x2x128xf32>,
    %cst_20 = arith.constant 4.062000e-01 : f32
    %45 = vector.broadcast %cst_20 : f32 to vector<2x128xf32>
    %46 = arith.mulf %45, %5 : vector<2x128xf32>
    %cst_21 = arith.constant 5.581000e-01 : f32
    %47 = vector.broadcast %cst_21 : f32 to vector<2x128xf32>
    %48 = arith.mulf %47, %10 : vector<2x128xf32>
    %49 = arith.addf %46, %48 : vector<2x128xf32>
    %cst_22 = arith.constant 0.000000e+00 : f32
    %50 = vector.broadcast %cst_22 : f32 to vector<2x128xf32>
    %51 = arith.subf %50, %49 : vector<2x128xf32>
    %52 = math.exp %51 : vector<2x128xf32>
    %cst_23 = arith.constant 2.400000e+02 : f32
    %53 = vector.broadcast %cst_23 : f32 to vector<2x128xf32>
    %54 = arith.mulf %53, %52 : vector<2x128xf32>
    %cst_24 = arith.constant 2.550000e+02 : f32
    %55 = vector.broadcast %cst_24 : f32 to vector<2x128xf32>
    %56 = arith.minimumf %54, %55 : vector<2x128xf32>
    %57 = math.floor %56 : vector<2x128xf32>
    %cst_25 = arith.constant 0.00392156886 : f32
    %58 = vector.broadcast %cst_25 : f32 to vector<2x128xf32>
    %59 = arith.mulf %57, %58 : vector<2x128xf32>
    %60 = vector.shape_cast %59 : vector<2x128xf32> to vector<1x2x128xf32>
    %c2 = arith.constant 2 : index
    %c0_26 = arith.constant 0 : index
    %c0_27 = arith.constant 0 : index
    %61 = vector.load %arg3[%c2, %c0_26, %c0_27] : memref<3x2x128xf32, #tpu.memory_space<vmem>>, vector<1x2x128xf32>
    tpu.vector_store %arg3[%c2, %c0_26, %c0_27], %60 {strides = array<i32>} : memref<3x2x128xf32, #tpu.memory_space<vmem>>, vector<1x2x128xf32>,
    return
  }
  func.func @transform_0(%arg0: i32) -> (i32, i32, i32) {
    %c0_i32 = arith.constant 0 : i32
    %c0_i32_0 = arith.constant 0 : i32
    %c0_i32_1 = arith.constant 0 : i32
    return %c0_i32, %arg0, %c0_i32_0 : i32, i32, i32
  }
  func.func @transform_1(%arg0: i32) -> i32 {
    %c0_i32 = arith.constant 0 : i32
    %c0_i32_0 = arith.constant 0 : i32
    return %c0_i32 : i32
  }
  func.func @transform_2(%arg0: i32) -> (i32, i32, i32) {
    %c0_i32 = arith.constant 0 : i32
    %c0_i32_0 = arith.constant 0 : i32
    %c0_i32_1 = arith.constant 0 : i32
    return %c0_i32, %arg0, %c0_i32_0 : i32, i32, i32
  }
}

</mosaic_0001>

<bundles_post_ra>
// kernel: custom-call.10
= control target key start
LH: loop header
LB: loop body
LE: loop exit
PB: predicated region body
PF: predicated region fallthrough
CT: control target
= control target key end

     0   :  { %v292_v3 = vlaneseq  ;;  %v1743_v5 = vmov 0.0   ;;  %s281_s17 = smov [#allocation22]  ;;  %s284_s18 = smov [#allocation23]  ;;  %s2025_s0 = inlined_call_operand.vmem [shape: f32[2,2], index: 0, kind: input, shape index: {}]   ;;  %s2026_s1 = inlined_call_operand.vmem [shape: f32[2,2], index: 1, kind: input, shape index: {}]   ;;  %s2027_s2 = inlined_call_operand.vmem [shape: f32[2,2], index: 2, kind: input, shape index: {}]   ;;  %s2028_s3 = inlined_call_operand.vmem [shape: f32[2,2], index: 3, kind: input, shape index: {}]   ;;  %s2029_s4 = inlined_call_operand.vmem [shape: f32[2], index: 4, kind: output, shape index: {0}]   ;;  %s2030_s5 = inlined_call_operand.vmem [shape: f32[2], index: 5, kind: output, shape index: {1}]   ;;  %s2031_s6 = inlined_call_operand.vmem [shape: f32[2,2], index: 6, kind: output, shape index: {2}]   ;;  %s2032_s7 = inlined_call_operand.vmem [shape: f32[2,2], index: 7, kind: output, shape index: {3}]   ;;  %s2033_s8 = inlined_call_operand.vmem [shape: f32[2,2], index: 8, kind: output, shape index: {4}]   ;;  %s2034_s9 = inlined_call_operand.vmem [shape: f32[2,2], index: 9, kind: output, shape index: {5}]  }
   0x1   :  { %v71_v0 = vld [vmem:[%s2025_s0] sm:$0x3]  ;;  %287 = vst [vmem:[#allocation12] sm:$0xff] %v1743_v5  ;;  %288 = vst [vmem:[#allocation14] sm:$0xff] %v1743_v5  ;;  %s291_s0 = smov [#allocation12]  ;;  %s1441_s19 = smov [#allocation20] }
   0x2   :  { %v133_v1 = vld [vmem:[%s2026_s1] sm:$0x3]  ;;  %72 = vst [vmem:[#allocation1] sm:$0x3] %v71_v0  ;;  %289 = vst [vmem:[#allocation16] sm:$0xff] %v1743_v5  ;;  %v1808_v6 = vand.u32 127, %v292_v3 }
   0x3   :  { %v195_v2 = vld [vmem:[%s2027_s2] sm:$0x3]  ;;  %134 = vst [vmem:[#allocation3] sm:$0x3] %v133_v1  ;;  %290 = vst [vmem:[#allocation18] sm:$0xff] %v1743_v5  ;;  %v1810_v7 = vshrl.u32 %v292_v3, 7 }
   0x4   :  { %196 = vst [vmem:[#allocation5] sm:$0x3] %v195_v2  ;;  %v257_v4 = vld [vmem:[%s2028_s3] sm:$0x3]  ;;  %v294_v6 = vmov %v1808_v6  ;;  %s304_s1 = smov [#allocation18]  ;;  %s275_s2 = smov [#allocation20] }
   0x5   :  { %258 = vst [vmem:[#allocation7] sm:$0x3] %v257_v4  ;;  %v297_v7 = vmov %v1810_v7  ;;  %v307_v6 = vmov %v1808_v6  ;;  %s278_s3 = smov [#allocation21]  ;;  %vm1445_vm2 = vcmp.lt.s32.totalorder %v1808_v6, 2  ;;  %s1458_s20 = smov [#allocation21] }
   0x6   :  { %v310_v7 = vmov %v1810_v7  ;;  %vm301_vm0 = vcmp.eq.s32.totalorder %v297_v7, %v294_v6  ;;  %s1475_s21 = smov [#allocation22]  ;;  %s1492_s22 = smov [#allocation23] }
   0x7   :  { %vm314_vm1 = vcmp.eq.s32.totalorder %v310_v7, %v307_v6  ;;  %v1437_v6 = vmov %v1808_v6  ;;  %v1440_v7 = vmov %v1810_v7 }
   0x8   :  { %v298_v12 = vld [vmem:[%s291_s0] sm:$0x3]  ;;  %vm1450_vm3 = vcmp.eq.s32.totalorder %v1440_v7, %v1437_v6  ;;  %v1488_v6 = vmov %v1808_v6  ;;  %v1457_v7 = vmov %v1810_v7 }
   0x9   :  { %v261_v8 = vld [vmem:[#allocation1] sm:$0x3]  ;;  %v302_v14 = vsel %vm301_vm0, 1.0, %v298_v12  ;;  %v1454_v6 = vmov %v1808_v6  ;;  %v1491_v7 = vmov %v1810_v7 }
   0xa   :  { %v265_v9 = vld [vmem:[#allocation3] sm:$0x3]  ;;  %262 = vst [vmem:[#allocation0] sm:$0x3] %v261_v8  ;;  %v311_v13 = vld [vmem:[%s304_s1] sm:$0x3]  ;;  %v1471_v6 = vmov %v1808_v6  ;;  %v1474_v7 = vmov %v1810_v7  ;;  %vm1501_vm4 = vcmp.eq.s32.totalorder %v1491_v7, %v1488_v6 }
   0xb   :  { %v269_v10 = vld [vmem:[#allocation5] sm:$0x3]  ;;  %266 = vst [vmem:[#allocation2] sm:$0x3] %v265_v9  ;;  %v315_v15 = vsel %vm314_vm1, 1.0, %v311_v13  ;;  %303 = vst [vmem:[%s291_s0] sm:$0x3] %v302_v14 }
   0xc   :  { %270 = vst [vmem:[#allocation4] sm:$0x3] %v269_v10  ;;  %v273_v11 = vld [vmem:[#allocation7] sm:$0x3]  ;;  %316 = vst [vmem:[%s304_s1] sm:$0x3] %v315_v15 }
   0xd   :  { %274 = vst [vmem:[#allocation6] sm:$0x3] %v273_v11 }
  0x11   :  { %v276_v16 = vld [vmem:[#allocation0] sm:$0xff] }
  0x12   :  { %v279_v17 = vld [vmem:[#allocation2] sm:$0xff]  ;;  %277 = vst [vmem:[%s275_s2] sm:$0xff] %v276_v16 }
  0x13   :  { %v282_v18 = vld [vmem:[#allocation4] sm:$0xff]  ;;  %280 = vst [vmem:[%s278_s3] sm:$0xff] %v279_v17 }
  0x14   :  { %283 = vst [vmem:[%s281_s17] sm:$0xff] %v282_v18  ;;  %v285_v19 = vld [vmem:[#allocation6] sm:$0xff] }
  0x15   :  { %286 = vst [vmem:[%s284_s18] sm:$0xff] %v285_v19 }
  0x19   :  { %v1447_v20 = vld [vmem:[%s1441_s19] sm:$0x3] }
  0x1a   :  { %v1464_v21 = vld [vmem:[%s1458_s20] sm:$0x3]  ;;  %v1448_v22 = vsel %vm1445_vm2, %v1447_v20, 0.0 }
  0x1b   :  { %v1465_v23 = vsel %vm1445_vm2, %v1464_v21, 0.0  ;;  %v1481_v24 = vld [vmem:[%s1475_s21] sm:$0x3]  ;;  %v1449_v26 = vmul.f32 %v1448_v22, %v1448_v22 }
  0x1c   :  { %v1498_v25 = vld [vmem:[%s1492_s22] sm:$0x3]  ;;  %v1466_v27 = vmul.f32 %v1465_v23, %v1465_v23  ;;  %v1482_v28 = vsel %vm1445_vm2, %v1481_v24, 0.0 }
  0x1d   :  { %v1499_v29 = vsel %vm1445_vm2, %v1498_v25, 0.0  ;;  %v1483_v30 = vmul.f32 %v1482_v28, %v1482_v28  ;;  %v1451_v33 = vsel %vm1450_vm3, 0.0, %v1449_v26 }
  0x1e   :  { %v1468_v31 = vadd.f32 %v1466_v27, %v1449_v26  ;;  %v1500_v32 = vmul.f32 %v1499_v29, %v1499_v29  ;;  %v1467_v34 = vadd.f32 %v1466_v27, %v1451_v33 }
  0x20   :  { %v1485_v35 = vadd.f32 %v1483_v30, %v1468_v31  ;;  %v1484_v36 = vadd.f32 %v1483_v30, %v1467_v34  ;;  %v1502_v37 = vsel %vm1501_vm4, 0.0, %v1500_v32 }
  0x22   :  { %v1504_v38 = vadd.f32 %v1500_v32, %v1485_v35  ;;  %v1503_v39 = vadd.f32 %v1502_v37, %v1484_v36 }
  0x24   :  { %1505 = vadd.xlane.f32.xlu0 %v1504_v38 }
  0x28   :  { %1513 = vadd.xlane.f32.xlu0 %v1503_v39 }
  0xb1   :  { %v1506_v40 = vpop.xlane.xlu0 %1505 }
  0xb2   :  { %v1507_v41 = vrot.slane %v1506_v40, 4 }
  0xb4   :  { %v1508_v42 = vadd.f32 %v1507_v41, %v1506_v40 }
  0xb5   :  { %v1514_v43 = vpop.xlane.xlu0 %1513 }
  0xb6   :  { %v1509_v44 = vrot.slane %v1508_v42, 2  ;;  %v1515_v45 = vrot.slane %v1514_v43, 4 }
  0xb8   :  { %v1516_v46 = vadd.f32 %v1515_v45, %v1514_v43  ;;  %v1510_v47 = vadd.f32 %v1509_v44, %v1508_v42 }
  0xba   :  { %v1517_v48 = vrot.slane %v1516_v46, 2  ;;  %v1511_v50 = vrot.slane %v1510_v47, 1 }
  0xbc   :  { %v1518_v49 = vadd.f32 %v1517_v48, %v1516_v46  ;;  %v1512_v53 = vadd.f32 %v1511_v50, %v1510_v47 }
  0xbe   :  { %v1519_v51 = vrot.slane %v1518_v49, 1 }
  0xc0   :  { %v1520_v52 = vadd.f32 %v1519_v51, %v1518_v49 }
  0xc2   :  { %1692 = vpush %v1520_v52 }
  0xc3   :  { %1694 = vpush %v1512_v53 }
  0xf3   :  { %s1693_s23 = spop %1692 }
  0xf4   :  { %s1695_s24 = spop %1694 }
  0xf5   :  { %s1523_s25 = smul.f32 1e-10, %s1695_s24 }
  0xf7   :  { %p1524_p0 = scmp.le.f32.partialorder %s1693_s23, %s1523_s25 }
  0xf8   :  { %s1834_s26 = smov (!%p1524_p0), 0  }
  0xf9   :  { %1527 = sbr.rel (%p1524_p0) target bundleno = 931 (0x3a3), region = 440 }
 0x100 LB: > { %s1839_s27 = smov 0   ;;  %s1737_s26 = sphi %s1834_s26, %s2035_s26  }
 0x101 LB: >> { %s421_s28 = smov [#allocation20]  ;;  %v425_v6 = vmov %v1808_v6  ;;  %v428_v7 = vmov %v1810_v7  ;;  %s441_s29 = smov [#allocation21]  ;;  %vm744_vm14 = vcmp.eq.s32.totalorder %v1810_v7, 0  ;;  %vm756_vm15 = vcmp.eq.s32.totalorder %v1810_v7, 1  ;;  %s1741_s27 = sphi %s1839_s27, %s420_s27  }
 0x102   : >> { %v445_v6 = vmov %v1808_v6  ;;  %v448_v7 = vmov %v1810_v7  ;;  %v429_v54 = vld [vmem:[%s421_s28] sm:$0x3]  ;;  %vm432_vm5 = vcmp.eq.s32.totalorder %v428_v7, %v425_v6  ;;  %s461_s30 = smov [#allocation23]  ;;  %s422_s10 = smov [#allocation24] }
 0x103   : >> { %vm452_vm6 = vcmp.eq.s32.totalorder %v448_v7, %v445_v6  ;;  %v465_v6 = vmov %v1808_v6  ;;  %v468_v7 = vmov %v1810_v7  ;;  %v433_v55 = vsel %vm432_vm5, %v429_v54, 0.0  ;;  %v449_v56 = vld [vmem:[%s441_s29] sm:$0x3]  ;;  %s442_s11 = smov [#allocation25]  ;;  %s462_s12 = smov [#allocation26] }
 0x104   : >> { %vm472_vm7 = vcmp.eq.s32.totalorder %v468_v7, %v465_v6  ;;  %v434_v57 = vrot.slane %v433_v55, 4  ;;  %v453_v58 = vsel %vm452_vm6, %v449_v56, 0.0  ;;  %v469_v59 = vld [vmem:[%s461_s30] sm:$0x3]  ;;  %s485_s13 = smov [#allocation25]  ;;  %s483_s14 = smov [#allocation24]  ;;  %v534_v6 = vmov %v1808_v6 }
 0x105   : >> { %v454_v60 = vrot.slane %v453_v58, 4  ;;  %v473_v61 = vsel %vm472_vm7, %v469_v59, 0.0  ;;  %s487_s15 = smov [#allocation26]  ;;  %s522_s16 = smov [#allocation27]  ;;  %v537_v7 = vmov %v1810_v7  ;;  %v549_v6 = vmov %v1808_v6 }
 0x106   : >> { %v435_v62 = vadd.f32 %v434_v57, %v433_v55  ;;  %v474_v63 = vrot.slane %v473_v61, 4  ;;  %s524_s0 = smov [#allocation28]  ;;  %s481_s1 = smov [#allocation29]  ;;  %v552_v7 = vmov %v1810_v7  ;;  %vm539_vm12 = vcmp.eq.s32.totalorder %v537_v7, %v534_v6 }
 0x107   : >> { %v455_v0 = vadd.f32 %v454_v60, %v453_v58  ;;  %s482_s2 = smov [#allocation30]  ;;  %s526_s1 = smov %s481_s1  ;;  %vm554_vm13 = vcmp.eq.s32.totalorder %v552_v7, %v549_v6  ;;  %v647_v6 = vmov %v1808_v6  ;;  %v650_v7 = vmov %v1810_v7 }
 0x108   : >> { %v436_v1 = vrot.slane %v435_v62, 2  ;;  %v475_v2 = vadd.f32 %v474_v63, %v473_v61  ;;  %s528_s2 = smov %s482_s2  ;;  %s530_s3 = smov [#allocation29]  ;;  %v661_v6 = vmov %v1808_v6  ;;  %v664_v7 = vmov %v1810_v7 }
 0x109   : >> { %v456_v3 = vrot.slane %v455_v0, 2  ;;  %s545_s17 = smov [#allocation30]  ;;  %s543_s18 = smov [#allocation31]  ;;  %vm654_vm0 = vcmp.eq.s32.totalorder %v650_v7, %v647_v6  ;;  %v620_v6 = vmov %v1808_v6  ;;  %v623_v7 = vmov %v1810_v7 }
 0x10a   : >> { %v437_v4 = vadd.f32 %v436_v1, %v435_v62  ;;  %v476_v5 = vrot.slane %v475_v2, 2  ;;  %s560_s19 = smov [#allocation31]  ;;  %s1854_s20 = smov [#allocation20]  ;;  %v634_v6 = vmov %v1808_v6  ;;  %v637_v7 = vmov %v1810_v7 }
 0x10b   : >> { %v457_v8 = vadd.f32 %v456_v3, %v455_v0  ;;  %s558_s21 = smov [#allocation32]  ;;  %s1856_s22 = smov [#allocation21]  ;;  %v568_v53 = vld [vmem:[%s1854_s20] sm:$0x3]  ;;  %vm669_vm1 = vcmp.eq.s32.totalorder %v664_v7, %v661_v6  ;;  %vm628_vm3 = vcmp.eq.s32.totalorder %v623_v7, %v620_v6  ;;  %vm641_vm4 = vcmp.eq.s32.totalorder %v637_v7, %v634_v6 }
 0x10c   : >> { %v438_v9 = vrot.slane %v437_v4, 1  ;;  %v477_v10 = vadd.f32 %v476_v5, %v475_v2  ;;  %s1858_s23 = smov [#allocation22]  ;;  %s1860_s24 = smov [#allocation23]  ;;  %v569_v54 = vld [vmem:[%s1856_s22] sm:$0x3]  ;;  %vm683_vm5 = vcmp.eq.s32.totalorder %v1808_v6, 0 }
 0x10d   : >> { %v458_v11 = vrot.slane %v457_v8, 1  ;;  %s1862_s25 = smov [#allocation12]  ;;  %s1864_s28 = smov [#allocation14]  ;;  %v570_v55 = vld [vmem:[%s1858_s23] sm:$0x3]  ;;  %vm687_vm6 = vcmp.eq.s32.totalorder %v1808_v6, 1 }
 0x10e   : >> { %v439_v12 = vadd.f32 %v438_v9, %v437_v4  ;;  %v478_v13 = vrot.slane %v477_v10, 1  ;;  %s1866_s29 = smov [#allocation16]  ;;  %s784_s30 = smov [#allocation31]  ;;  %v571_v56 = vld [vmem:[%s1860_s24] sm:$0x3] }
 0x10f   : >> { %v459_v14 = vadd.f32 %v458_v11, %v457_v8  ;;  %v792_v57 = vld [vmem:[%s1862_s25] sm:$0x3]  ;;  %s420_s27 = sadd.s32 1, %s1741_s27  }
 0x110   : >> { %440 = vst [vmem:[%s422_s10] sm:$0x1] %v439_v12  ;;  %v479_v15 = vadd.f32 %v478_v13, %v477_v10  ;;  %s1870_s10 = smov [#allocation18]  ;;  %v793_v58 = vld [vmem:[%s1864_s28] sm:$0x3]  ;;  %p417_p1 = scmp.ge.s32.totalorder %s420_s27, 3  }
 0x111   : >> { %460 = vst [vmem:[%s442_s11] sm:$0x1] %v459_v14  ;;  %v794_v59 = vld [vmem:[%s1866_s29] sm:$0x3]  ;;  %s562_s11 = smov [#allocation32]  ;;  %v321_v6 = vmov (%p417_p1), %v1808_v6  ;;  %v324_v7 = vmov (%p417_p1), %v1810_v7 }
 0x112   : >> { %480 = vst [vmem:[%s462_s12] sm:$0x1] %v479_v15  ;;  %v795_v61 = vld [vmem:[%s1870_s10] sm:$0x3]  ;;  %s786_s12 = smov [#allocation32]  ;;  %v374_v6 = vmov (%p417_p1), %v1808_v6  ;;  %vm336_vm7 = vcmp.eq.s32.totalorder (%p417_p1), %v324_v7, %v321_v6  ;;  %v377_v7 = vmov (%p417_p1), %v1810_v7 }
 0x113   : > { %v340_v6 = vmov (%p417_p1), %v1808_v6  ;;  %v343_v7 = vmov (%p417_p1), %v1810_v7 }
 0x114   : > { %v357_v6 = vmov (%p417_p1), %v1808_v6  ;;  %v360_v7 = vmov (%p417_p1), %v1810_v7 }
 0x117   : >> { %v484_v18 = vld [vmem:[%s483_s14] sm:$0xff]  ;;  %s590_s14 = smov [#allocation30] }
 0x118   : >> { %v486_v16 = vld [vmem:[%s485_s13] sm:$0xff]  ;;  %v507_v31 = vand.u32 2147483647, %v484_v18  ;;  %s588_s13 = smov [#allocation29] }
 0x119   : >> { %v490_v17 = vmul.f32 2.0, %v486_v16  ;;  %v488_v19 = vld [vmem:[%s487_s15] sm:$0xff]  ;;  %v508_v36 = vand.u32 2147483647, %v486_v16  ;;  %s1886_s15 = smov [#allocation12] }
 0x11a   : >> { %v489_v20 = vsub.f32 %v488_v19, %v484_v18  ;;  %v509_v32 = vand.u32 2147483647, %v488_v19 }
 0x11b   : >> { %1719 = vrcp.f32 %v490_v17 }
 0x11c   : >> { %v510_v35 = vmin.f32 %v507_v31, %v509_v32 }
 0x11e   : >> { %v511_v37 = vmul.f32 1.1920929e-08, %v510_v35 }
 0x120   : >> { %vm512_vm11 = vcmp.le.f32.partialorder %v508_v36, %v511_v37 }
 0x125   : >> { %v1720_v21 = vpop.eup %1719 }
 0x126   : >> { %v492_v22 = vmul.f32 %v1720_v21, %v489_v20 }
 0x128   : >> { %v494_v23 = vmul.f32 %v492_v22, %v492_v22  ;;  %vm493_vm10 = vcmp.ge.f32.partialorder %v492_v22, 0.0 }
 0x12a   : >> { %v495_v24 = vadd.f32 1.0, %v494_v23 }
 0x12c   : >> { %1721 = vrsqrt.f32 %v495_v24  ;;  %vm498_vm8 = vcmp.eq.f32.partialorder %v495_v24, inf  ;;  %v501_v26 = vand.u32 2147483648, %v495_v24  ;;  %vm500_vm9 = vcmp.eq.f32.partialorder %v495_v24, 0.0 }
 0x136   : >> { %v1722_v25 = vpop.eup %1721 }
 0x137   : >> { %v497_v27 = vmul.f32 %v1722_v25, %v495_v24 }
 0x139   : >> { %v499_v28 = vsel %vm498_vm8, %v495_v24, %v497_v27  ;;  %vm389_vm8 = vcmp.eq.s32.totalorder (%p417_p1), %v377_v7, %v374_v6 }
 0x13a   : >> { %v502_v29 = vsel %vm500_vm9, %v501_v26, %v499_v28 }
 0x13b   : >> { %v503_v30 = vxor.u32 2147483648, %v502_v29 }
 0x13d   : >> { %v504_v33 = vsel %vm493_vm10, %v502_v29, %v503_v30 }
 0x13e   : >> { %v505_v34 = vadd.f32 %v504_v33, %v492_v22 }
 0x140   : >> { %1723 = vrcp.f32 %v505_v34 }
 0x14a   : >> { %v1724_v38 = vpop.eup %1723 }
 0x14b   : >> { %v513_v39 = vsel %vm512_vm11, 0.0, %v1724_v38 }
 0x14c   : >> { %v514_v40 = vmul.f32 %v513_v39, %v513_v39  ;;  %v518_v41 = vmul.f32 %v513_v39, %v486_v16 }
 0x14e   : >> { %v515_v42 = vadd.f32 1.0, %v514_v40  ;;  %v519_v43 = vsub.f32 %v484_v18, %v518_v41  ;;  %v521_v44 = vadd.f32 %v518_v41, %v488_v19 }
 0x150   : >> { %1725 = vrsqrt.f32 %v515_v42  ;;  %523 = vst [vmem:[%s522_s16] sm:$0xff] %v519_v43  ;;  %525 = vst [vmem:[%s524_s0] sm:$0xff] %v521_v44  ;;  %s1888_s16 = smov [#allocation22]  ;;  %s1890_s0 = smov [#allocation23] }
 0x15a   : >> { %v1726_v45 = vpop.eup %1725 }
 0x15b   : >> { %527 = vst [vmem:[%s526_s1] sm:$0xff] %v1726_v45  ;;  %v517_v46 = vmul.f32 %v1726_v45, %v513_v39  ;;  %s1892_s1 = smov [#allocation20] }
 0x15d   : >> { %529 = vst [vmem:[%s528_s2] sm:$0xff] %v517_v46  ;;  %s1894_s2 = smov [#allocation16] }
 0x162   : >> { %v531_v47 = vld [vmem:[%s530_s3] ss:$0 sm:$0xff]  ;;  %s1896_s3 = smov [#allocation14] }
 0x163   : >> { %v540_v48 = vsel %vm539_vm12, %v531_v47, 0.0  ;;  %v589_v27 = vld [vmem:[%s588_s13] ss:$0 sm:$0xff]  ;;  %s760_s13 = smov [#allocation21] }
 0x164   : >> { %541 = vadd.xlane.f32.xlu0 %v540_v48  ;;  %v546_v49 = vld [vmem:[%s545_s17] ss:$0 sm:$0xff]  ;;  %s1900_s17 = smov [#allocation18] }
 0x165   : >> { %v555_v50 = vsel %vm554_vm13, %v546_v49, 0.0  ;;  %v591_v28 = vld [vmem:[%s590_s14] ss:$0 sm:$0xff]  ;;  %s737_s14 = smov [#allocation22] }
 0x168   : >> { %556 = vadd.xlane.f32.xlu0 %v555_v50 }
 0x1f1   : >> { %v542_v51 = vpop.xlane.xlu0 %541 }
 0x1f2   : >> { %544 = vst [vmem:[%s543_s18] sm:$0xff] %v542_v51  ;;  %s1902_s18 = smov [#allocation21] }
 0x1f5   : >> { %v557_v52 = vpop.xlane.xlu0 %556 }
 0x1f6   : >> { %559 = vst [vmem:[%s558_s21] sm:$0xff] %v557_v52  ;;  %s657_s21 = smov [#allocation23] }
 0x1f9   : >> { %v561_v60 = vld [vmem:[%s560_s19] sm:$0xff]  ;;  %s658_s19 = smov [#allocation28] }
 0x1fa   : >> { %v785_v62 = vld [vmem:[%s784_s30] sm:$0xff]  ;;  %v572_v63 = vmul.f32 %v568_v53, %v561_v60  ;;  %v575_v0 = vmul.f32 %v569_v54, %v561_v60  ;;  %v579_v1 = vmul.f32 %v570_v55, %v561_v60  ;;  %v582_v2 = vmul.f32 %v571_v56, %v561_v60  ;;  %s673_s30 = smov [#allocation21] }
 0x1fb   : >> { %v796_v3 = vmul.f32 %v792_v57, %v785_v62  ;;  %v799_v4 = vmul.f32 %v793_v58, %v785_v62  ;;  %v803_v5 = vmul.f32 %v794_v59, %v785_v62  ;;  %v806_v8 = vmul.f32 %v795_v61, %v785_v62 }
 0x1fd   : >> { %v563_v9 = vld [vmem:[%s562_s11] sm:$0xff]  ;;  %s1947_s11 = smov [#allocation23] }
 0x1fe   : >> { %v787_v10 = vld [vmem:[%s786_s12] sm:$0xff]  ;;  %v573_v11 = vmul.f32 %v570_v55, %v563_v9  ;;  %v576_v12 = vmul.f32 %v571_v56, %v563_v9  ;;  %v578_v13 = vmul.f32 %v568_v53, %v563_v9  ;;  %v581_v14 = vmul.f32 %v569_v54, %v563_v9  ;;  %s736_s12 = smov [#allocation20] }
 0x1ff   : >> { %v797_v15 = vmul.f32 %v794_v59, %v787_v10  ;;  %v800_v16 = vmul.f32 %v795_v61, %v787_v10  ;;  %v802_v17 = vmul.f32 %v792_v57, %v787_v10  ;;  %v805_v18 = vmul.f32 %v793_v58, %v787_v10  ;;  %v665_v59 = vld [vmem:[%s658_s19] ss:$0 sm:$0xff] }
 0x200   : >> { %v574_v19 = vsub.f32 %v572_v63, %v573_v11  ;;  %v577_v20 = vsub.f32 %v575_v0, %v576_v12  ;;  %v580_v21 = vadd.f32 %v579_v1, %v578_v13  ;;  %v583_v22 = vadd.f32 %v582_v2, %v581_v14 }
 0x201   : >> { %v798_v23 = vsub.f32 %v796_v3, %v797_v15  ;;  %v801_v24 = vsub.f32 %v799_v4, %v800_v16  ;;  %v804_v25 = vadd.f32 %v803_v5, %v802_v17  ;;  %v807_v26 = vadd.f32 %v806_v8, %v805_v18 }
 0x202   : >> { %585 = vst [vmem:[%s1856_s22] sm:$0x3] %v577_v20  ;;  %587 = vst [vmem:[%s1860_s24] sm:$0x3] %v583_v22  ;;  %s617_s22 = smov [#allocation27]  ;;  %s631_s24 = smov [#allocation21] }
 0x203   : >> { %584 = vst [vmem:[%s1854_s20] sm:$0x3] %v574_v19  ;;  %586 = vst [vmem:[%s1858_s23] sm:$0x3] %v580_v21  ;;  %s644_s20 = smov [#allocation22]  ;;  %s616_s23 = smov [#allocation20]  ;;  %v624_v63 = vld [vmem:[%s617_s22] ss:$0 sm:$0xff] }
 0x204   : >> { %808 = vst [vmem:[%s1862_s25] sm:$0x3] %v798_v23  ;;  %809 = vst [vmem:[%s1864_s28] sm:$0x3] %v801_v24  ;;  %s1944_s25 = smov [#allocation22]  ;;  %s1744_s28 = smov 1  }
 0x205   : >> { %810 = vst [vmem:[%s1866_s29] sm:$0x3] %v804_v25  ;;  %811 = vst [vmem:[%s1870_s10] sm:$0x3] %v807_v26  ;;  %s672_s29 = smov [#allocation20]  ;;  %s1745_s10 = smov 127  }
 0x209   : >> { %v599_v30 = vld [vmem:[%s1890_s0] sm:$0x3] }
 0x20a   : >> { %v598_v29 = vld [vmem:[%s1888_s16] sm:$0x3]  ;;  %v607_v36 = vmul.f32 %v599_v30, %v591_v28  ;;  %v610_v42 = vmul.f32 %v599_v30, %v589_v27 }
 0x20b   : >> { %v596_v31 = vld [vmem:[%s1892_s1] sm:$0x3]  ;;  %v606_v35 = vmul.f32 %v598_v29, %v589_v27  ;;  %v609_v37 = vmul.f32 %v598_v29, %v591_v28 }
 0x20c   : >> { %v814_v32 = vld [vmem:[%s1886_s15] ss:$0 sm:$0xff]  ;;  %v1667_v34 = vld [vmem:[%s1886_s15 + $0x1] ss:$0 sm:$0xff]  ;;  %v600_v48 = vmul.f32 %v596_v31, %v589_v27  ;;  %v603_v49 = vmul.f32 %v596_v31, %v591_v28 }
 0x20d   : >> { %v1666_v33 = vld [vmem:[%s1886_s15 - $0x1] sm:$0x2]  ;;  %v1669_v40 = vld [vmem:[%s1894_s2 + $0x1] sm:$0x1]  ;;  %v608_v47 = vsub.f32 %v606_v35, %v607_v36  ;;  %v611_v53 = vadd.f32 %v610_v42, %v609_v37 }
 0x20e   : >> { %v821_v38 = vsel %vm744_vm14, %v814_v32, %v1666_v33  ;;  %v825_v39 = vld [vmem:[%s1894_s2] ss:$0 sm:$0xff]  ;;  %v833_v43 = vsel %vm756_vm15, %v1667_v34, %v1669_v40  ;;  %v1671_v45 = vld [vmem:[%s1896_s3 + $0x1] ss:$0 sm:$0xff] }
 0x20f   : >> { %v838_v41 = vld [vmem:[%s1896_s3] ss:$0 sm:$0xff]  ;;  %824 = vst [vmem:[%s1886_s15] sm:$0x3] %v821_v38  ;;  %835 = vst [vmem:[%s1894_s2] sm:$0x3] %v833_v43  ;;  %v1673_v51 = vld [vmem:[%s1900_s17 + $0x1] sm:$0x1] }
 0x210   : >> { %v1670_v44 = vld [vmem:[%s1896_s3 - $0x1] sm:$0x2]  ;;  %1668 = vst [vmem:[%s1886_s15 + $0x1] sm:$0x1] %v825_v39  ;;  %v857_v54 = vsel %vm756_vm15, %v1671_v45, %v1673_v51  ;;  %614 = vst [vmem:[%s1888_s16] sm:$0x3] %v608_v47  ;;  %s761_s15 = smov [#allocation23] }
 0x211   : >> { %v849_v46 = vld [vmem:[%s1900_s17] ss:$0 sm:$0xff]  ;;  %v845_v50 = vsel %vm744_vm14, %v838_v41, %v1670_v44  ;;  %615 = vst [vmem:[%s1890_s0] sm:$0x3] %v611_v53  ;;  %s860_s16 = sadd.s32 (%p417_p1), 1, %s1737_s26   ;;  %s325_s0 = smov (%p417_p1), [#allocation20] }
 0x212   : >> { %v597_v52 = vld [vmem:[%s1902_s18] sm:$0x3]  ;;  %848 = vst [vmem:[%s1896_s3] sm:$0x3] %v845_v50  ;;  %859 = vst [vmem:[%s1900_s17] sm:$0x3] %v857_v54  ;;  %s361_s2 = smov (%p417_p1), [#allocation22]  ;;  %p413_p2 = scmp.ge.s32.totalorder (%p417_p1), %s860_s16, 15 }
 0x213   : >> { %v601_v55 = vmul.f32 %v597_v52, %v591_v28  ;;  %v604_v56 = vmul.f32 %v597_v52, %v589_v27  ;;  %1672 = vst [vmem:[%s1896_s3 + $0x1] sm:$0x1] %v849_v46  ;;  %s378_s3 = smov (%p417_p1), [#allocation23]  ;;  %s2035_s26 = smov (%p417_p1), %s860_s16 }
 0x215   : >> { %v602_v57 = vsub.f32 %v600_v48, %v601_v55  ;;  %v605_v58 = vadd.f32 %v604_v56, %v603_v49 }
 0x217   : >> { %612 = vst [vmem:[%s1892_s1] sm:$0x3] %v602_v57  ;;  %613 = vst [vmem:[%s1902_s18] sm:$0x3] %v605_v58  ;;  %v651_v60 = vld [vmem:[%s644_s20] sm:$0x3]  ;;  %s344_s1 = smov (%p417_p1), [#allocation21] }
 0x218   : >> { %v655_v61 = vsel %vm654_vm0, 0.0, %v651_v60  ;;  %v666_v62 = vld [vmem:[%s657_s21] sm:$0x3] }
 0x219   : >> { %656 = vst [vmem:[%s644_s20] sm:$0x3] %v655_v61  ;;  %v670_v0 = vsel %vm669_vm1, %v665_v59, %v666_v62 }
 0x21a   : >> { %671 = vst [vmem:[%s657_s21] sm:$0x3] %v670_v0 }
 0x21e   : >> { %v625_v1 = vld [vmem:[%s616_s23] sm:$0x3] }
 0x21f   : >> { %v638_v2 = vld [vmem:[%s631_s24] sm:$0x3]  ;;  %v629_v3 = vsel %vm628_vm3, %v624_v63, %v625_v1 }
 0x220   : >> { %v642_v4 = vsel %vm641_vm4, 0.0, %v638_v2  ;;  %630 = vst [vmem:[%s616_s23] sm:$0x3] %v629_v3  ;;  %v710_v5 = vld [vmem:[%s1944_s25] sm:$0x3] }
 0x221   : >> { %643 = vst [vmem:[%s631_s24] sm:$0x3] %v642_v4  ;;  %711 = vrot.lane.b32.xlu0 %v710_v5, %s1744_s28  ;;  %v706_v11 = vld [vmem:[%s1947_s11] sm:$0x3] }
 0x222   : >> { %v727_v12 = vld [vmem:[%s1947_s11] sm:$0x3] }
 0x223   : >> { %v709_v30 = vld [vmem:[%s1944_s25] sm:$0x3] }
 0x227   : >> { %v678_v8 = vld [vmem:[%s672_s29] sm:$0x3] }
 0x228   : >> { %679 = vrot.lane.b32.xlu1 %v678_v8, %s1744_s28  ;;  %v674_v9 = vld [vmem:[%s673_s30] sm:$0x3] }
 0x229   : >> { %v695_v10 = vld [vmem:[%s673_s30] sm:$0x3] }
 0x22a   : >> { %v677_v18 = vld [vmem:[%s672_s29] sm:$0x3] }
 0x22c   : >> { %675 = vrot.lane.b32.xlu1 %v674_v9, %s1744_s28 }
 0x230   : >> { %696 = vrot.lane.b32.xlu1 %v695_v10, %s1745_s10 }
 0x234   : >> { %707 = vrot.lane.b32.xlu1 %v706_v11, %s1744_s28 }
 0x238   : >> { %728 = vrot.lane.b32.xlu1 %v727_v12, %s1745_s10 }
 0x293   : >> { %v712_v20 = vpop.permute.xlu0 %711 }
 0x294   : >> { %v716_v22 = vsel %vm683_vm5, %v710_v5, %v712_v20 }
 0x29a   : >> { %v680_v13 = vpop.permute.xlu1 %679 }
 0x29b   : >> { %v684_v14 = vsel %vm683_vm5, %v678_v8, %v680_v13 }
 0x29e   : >> { %v676_v15 = vpop.permute.xlu1 %675 }
 0x29f   : >> { %v688_v16 = vsel %vm687_vm6, %v676_v15, %v684_v14 }
 0x2a0   : >> { %v694_v17 = vsel %vm1445_vm2, %v688_v16, 0.0 }
 0x2a1   : >> { %702 = vst [vmem:[%s672_s29] sm:$0x3] %v694_v17 }
 0x2a2   : >> { %v697_v19 = vpop.permute.xlu1 %696 }
 0x2a3   : >> { %v701_v21 = vsel %vm687_vm6, %v677_v18, %v697_v19 }
 0x2a4   : >> { %703 = vst [vmem:[%s673_s30] sm:$0x3] %v701_v21 }
 0x2a6   : >> { %v708_v23 = vpop.permute.xlu1 %707 }
 0x2a7   : >> { %v720_v24 = vsel %vm687_vm6, %v708_v23, %v716_v22 }
 0x2a8   : >> { %v738_v25 = vld [vmem:[%s736_s12] ss:$0 sm:$0xff]  ;;  %v1659_v27 = vld [vmem:[%s736_s12 + $0x1] ss:$0 sm:$0xff]  ;;  %v726_v29 = vsel %vm1445_vm2, %v720_v24, 0.0 }
 0x2a9   : >> { %v1658_v26 = vld [vmem:[%s736_s12 - $0x1] sm:$0x2]  ;;  %734 = vst [vmem:[%s1944_s25] sm:$0x3] %v726_v29 }
 0x2aa   : >> { %v745_v28 = vsel %vm744_vm14, %v738_v25, %v1658_v26  ;;  %v729_v31 = vpop.permute.xlu1 %728 }
 0x2ab   : >> { %748 = vst [vmem:[%s736_s12] sm:$0x3] %v745_v28  ;;  %v762_v32 = vld [vmem:[%s760_s13] ss:$0 sm:$0xff]  ;;  %v1663_v34 = vld [vmem:[%s760_s13 + $0x1] ss:$0 sm:$0xff]  ;;  %v733_v35 = vsel %vm687_vm6, %v709_v30, %v729_v31 }
 0x2ac   : >> { %v1662_v33 = vld [vmem:[%s760_s13 - $0x1] sm:$0x2]  ;;  %735 = vst [vmem:[%s1947_s11] sm:$0x3] %v733_v35 }
 0x2ad   : >> { %v769_v36 = vsel %vm744_vm14, %v762_v32, %v1662_v33 }
 0x2ae   : >> { %772 = vst [vmem:[%s760_s13] sm:$0x3] %v769_v36 }
 0x2b0   : >> { %v749_v37 = vld [vmem:[%s737_s14] ss:$0 sm:$0xff]  ;;  %v1661_v38 = vld [vmem:[%s737_s14 + $0x1] sm:$0x1] }
 0x2b1   : >> { %1660 = vst [vmem:[%s736_s12 + $0x1] sm:$0x1] %v749_v37  ;;  %v757_v39 = vsel %vm756_vm15, %v1659_v27, %v1661_v38  ;;  %419 = sbr.rel (!%p417_p1) target bundleno = 257 (0x101), region = 435 }
 0x2b2   : >> { %759 = vst [vmem:[%s737_s14] sm:$0x3] %v757_v39 }
 0x2b3   : >> { %v773_v40 = vld [vmem:[%s761_s15] ss:$0 sm:$0xff]  ;;  %v1665_v41 = vld [vmem:[%s761_s15 + $0x1] sm:$0x1] }
 0x2b4   : >> { %1664 = vst [vmem:[%s760_s13 + $0x1] sm:$0x1] %v773_v40  ;;  %v781_v42 = vsel %vm756_vm15, %v1663_v34, %v1665_v41 }
 0x2b5   : >> { %783 = vst [vmem:[%s761_s15] sm:$0x3] %v781_v42 }
 0x2b8   : > { %v331_v43 = vld [vmem:[%s325_s0] sm:$0x3] }
 0x2b9   : > { %v332_v45 = vsel %vm1445_vm2, %v331_v43, 0.0  ;;  %v367_v47 = vld [vmem:[%s361_s2] sm:$0x3] }
 0x2ba   : > { %v333_v49 = vmul.f32 %v332_v45, %v332_v45  ;;  %v368_v51 = vsel %vm1445_vm2, %v367_v47, 0.0 }
 0x2bb   : > { %v350_v44 = vld [vmem:[%s344_s1] sm:$0x3]  ;;  %v369_v53 = vmul.f32 %v368_v51, %v368_v51 }
 0x2bc   : > { %v351_v46 = vsel %vm1445_vm2, %v350_v44, 0.0  ;;  %v384_v48 = vld [vmem:[%s378_s3] sm:$0x3]  ;;  %v337_v56 = vsel %vm336_vm7, 0.0, %v333_v49 }
 0x2bd   : > { %v352_v50 = vmul.f32 %v351_v46, %v351_v46  ;;  %v385_v52 = vsel %vm1445_vm2, %v384_v48, 0.0 }
 0x2be   : > { %v386_v55 = vmul.f32 %v385_v52, %v385_v52 }
 0x2bf   : > { %v354_v54 = vadd.f32 %v352_v50, %v333_v49  ;;  %v353_v57 = vadd.f32 %v352_v50, %v337_v56 }
 0x2c0   : > { %v390_v60 = vsel %vm389_vm8, 0.0, %v386_v55 }
 0x2c1   : > { %v371_v58 = vadd.f32 %v369_v53, %v354_v54  ;;  %v370_v59 = vadd.f32 %v369_v53, %v353_v57 }
 0x2c3   : > { %v392_v61 = vadd.f32 %v386_v55, %v371_v58  ;;  %v391_v62 = vadd.f32 %v390_v60, %v370_v59 }
 0x2c5   : > { %393 = vadd.xlane.f32.xlu0 %v392_v61 }
 0x2c9   : > { %401 = vadd.xlane.f32.xlu0 %v391_v62 }
 0x352   : > { %v394_v63 = vpop.xlane.xlu0 %393 }
 0x353   : > { %v395_v0 = vrot.slane %v394_v63, 4 }
 0x355   : > { %v396_v1 = vadd.f32 %v395_v0, %v394_v63 }
 0x356   : > { %v402_v2 = vpop.xlane.xlu0 %401 }
 0x357   : > { %v397_v3 = vrot.slane %v396_v1, 2  ;;  %v403_v4 = vrot.slane %v402_v2, 4 }
 0x359   : > { %v404_v5 = vadd.f32 %v403_v4, %v402_v2  ;;  %v398_v8 = vadd.f32 %v397_v3, %v396_v1 }
 0x35b   : > { %v405_v9 = vrot.slane %v404_v5, 2  ;;  %v399_v11 = vrot.slane %v398_v8, 1 }
 0x35d   : > { %v406_v10 = vadd.f32 %v405_v9, %v404_v5  ;;  %v400_v14 = vadd.f32 %v399_v11, %v398_v8 }
 0x35f   : > { %v407_v12 = vrot.slane %v406_v10, 1 }
 0x361   : > { %v408_v13 = vadd.f32 %v407_v12, %v406_v10 }
 0x363   : > { %1696 = vpush %v408_v13 }
 0x364   : > { %1698 = vpush %v400_v14 }
 0x394   : > { %s1697_s27 = spop %1696 }
 0x395   : > { %s1699_s17 = spop %1698 }
 0x396   : > { %s411_s18 = smul.f32 1e-10, %s1699_s17 }
 0x398   : > { %p412_p3 = scmp.le.f32.partialorder %s1697_s27, %s411_s18 }
 0x39a   : > { %p414_p4 = por %p413_p2, %p412_p3 }
 0x39c   :  { %862 = sbr.rel (!%p414_p4) target bundleno = 256 (0x100), region = 446 }
 0x3a3 PF:  { %s863_s19 = smov [#allocation20]  ;;  %v867_v6 = vmov %v1808_v6  ;;  %v870_v7 = vmov %v1810_v7  ;;  %v918_v15 = vld [vmem:[#allocation12] sm:$0x3]  ;;  %v924_v16 = vld [vmem:[#allocation14] sm:$0x3]  ;;  %s883_s20 = smov [#allocation23] }
 0x3a4   :  { %v887_v6 = vmov %v1808_v6  ;;  %v890_v7 = vmov %v1810_v7  ;;  %v871_v17 = vld [vmem:[%s863_s19] sm:$0x3]  ;;  %vm874_vm9 = vcmp.eq.s32.totalorder %v870_v7, %v867_v6  ;;  %920 = vst [vmem:[#allocation13] sm:$0x3] %v918_v15  ;;  %926 = vst [vmem:[#allocation15] sm:$0x3] %v924_v16 }
 0x3a5   :  { %vm894_vm10 = vcmp.eq.s32.totalorder %v890_v7, %v887_v6  ;;  %v930_v18 = vld [vmem:[#allocation16] sm:$0x3]  ;;  %v875_v19 = vsel %vm874_vm9, %v871_v17, 0.0  ;;  %v891_v20 = vld [vmem:[%s883_s20] sm:$0x3]  ;;  %s864_s30 = smov [#allocation8] }
 0x3a6   :  { %932 = vst [vmem:[#allocation17] sm:$0x3] %v930_v18  ;;  %v936_v21 = vld [vmem:[#allocation18] sm:$0x3]  ;;  %v876_v22 = vrot.slane %v875_v19, 4  ;;  %v895_v23 = vsel %vm894_vm10, %v891_v20, 0.0 }
 0x3a7   :  { %938 = vst [vmem:[#allocation19] sm:$0x3] %v936_v21  ;;  %v896_v24 = vrot.slane %v895_v23, 4 }
 0x3a8   :  { %v877_v25 = vadd.f32 %v876_v22, %v875_v19 }
 0x3a9   :  { %v897_v26 = vadd.f32 %v896_v24, %v895_v23 }
 0x3aa   :  { %v878_v27 = vrot.slane %v877_v25, 2 }
 0x3ab   :  { %v898_v28 = vrot.slane %v897_v26, 2  ;;  %v1127_v29 = vld [vmem:[#allocation13] sm:$0x3]  ;;  %v1189_v30 = vld [vmem:[#allocation15] sm:$0x3] }
 0x3ac   :  { %v879_v31 = vadd.f32 %v878_v27, %v877_v25  ;;  %1128 = vst [vmem:[%s2031_s6] sm:$0x3] %v1127_v29  ;;  %1190 = vst [vmem:[%s2032_s7] sm:$0x3] %v1189_v30  ;;  %s884_s6 = smov [#allocation10] }
 0x3ad   :  { %v1251_v6 = vld [vmem:[#allocation17] sm:$0x3]  ;;  %v899_v7 = vadd.f32 %v898_v28, %v897_v26 }
 0x3ae   :  { %1252 = vst [vmem:[%s2033_s8] sm:$0x3] %v1251_v6  ;;  %v1313_v32 = vld [vmem:[#allocation19] sm:$0x3]  ;;  %v880_v33 = vrot.slane %v879_v31, 1 }
 0x3af   :  { %1314 = vst [vmem:[%s2034_s9] sm:$0x3] %v1313_v32  ;;  %v900_v34 = vrot.slane %v899_v7, 1 }
 0x3b0   :  { %v881_v35 = vadd.f32 %v880_v33, %v879_v31 }
 0x3b1   :  { %v901_v36 = vadd.f32 %v900_v34, %v899_v7 }
 0x3b2   :  { %882 = vst [vmem:[%s864_s30] sm:$0x1] %v881_v35 }
 0x3b3   :  { %902 = vst [vmem:[%s884_s6] sm:$0x1] %v901_v36 }
 0x3b9   :  { %v906_v37 = vld [vmem:[#allocation8] sm:$0x1] }
 0x3ba   :  { %908 = vst [vmem:[#allocation9] sm:$0x1] %v906_v37  ;;  %v912_v38 = vld [vmem:[#allocation10] sm:$0x1] }
 0x3bb   :  { %914 = vst [vmem:[#allocation11] sm:$0x1] %v912_v38 }
 0x3c1   :  { %v1001_v39 = vld [vmem:[#allocation9] sm:$0x1] }
 0x3c2   :  { %1002 = vst [vmem:[%s2029_s4] sm:$0x1] %v1001_v39  ;;  %v1065_v40 = vld [vmem:[#allocation11] sm:$0x1] }
 0x3c3   :  { %1066 = vst [vmem:[%s2030_s5] sm:$0x1] %v1065_v40 }

// kernel: macenko_normalize.4
= control target key start
LH: loop header
LB: loop body
LE: loop exit
PB: predicated region body
PF: predicated region fallthrough
CT: control target
= control target key end

     0   :  { %v155_v3 = vmov 0.0   ;;  %vm48_vm4 = vcmask 1041408   ;;  %s251_s0 = inlined_call_operand.vmem [shape: f32[3,2,128], index: 0, kind: input, shape index: {}]   ;;  %s252_s3 = inlined_call_operand.vmem [shape: f32[16,128], index: 3, kind: output, shape index: {2}]   ;;  %s253_s1 = inlined_call_operand.vmem [shape: f32[3,2,128], index: 1, kind: output, shape index: {0}]   ;;  %s254_s2 = inlined_call_operand.vmem [shape: f32[2,128], index: 2, kind: output, shape index: {1}]  }
   0x1   :  { %v11_v0 = vld [vmem:[%s251_s0] sm:$0x3]  ;;  %v12_v1 = vld [vmem:[%s251_s0 + $0x2] sm:$0x3]  ;;  %v13_v2 = vld [vmem:[%s251_s0 + $0x4] sm:$0x3]  ;;  %46 = vst [vmem:[%s252_s3] sm:$0xff] %v155_v3 }
   0x2   :  { %47 = vst [vmem:[%s252_s3 + $0x8] sm:$0xff] %v155_v3  ;;  %v14_v4 = vmul.f32 255.0, %v11_v0  ;;  %v15_v5 = vmul.f32 255.0, %v12_v1  ;;  %v16_v6 = vmul.f32 255.0, %v13_v2 }
   0x4   :  { %v17_v7 = vadd.f32 1.0, %v14_v4  ;;  %v18_v8 = vadd.f32 1.0, %v15_v5  ;;  %v19_v9 = vadd.f32 1.0, %v16_v6 }
   0x6   :  { %v20_v10 = vmul.f32 0.004166667, %v17_v7  ;;  %v21_v11 = vmul.f32 0.004166667, %v18_v8  ;;  %v22_v12 = vmul.f32 0.004166667, %v19_v9 }
   0x8   :  { %149 = vlog2.f32 %v20_v10 }
   0x9   :  { %151 = vlog2.f32 %v21_v11 }
   0xa   :  { %153 = vlog2.f32 %v22_v12 }
  0x12   :  { %v150_v13 = vpop.eup %149 }
  0x13   :  { %v152_v14 = vpop.eup %151  ;;  %v24_v15 = vmul.f32 0.6931472, %v150_v13 }
  0x14   :  { %v154_v16 = vpop.eup %153  ;;  %v26_v17 = vmul.f32 0.6931472, %v152_v14 }
  0x15   :  { %v28_v18 = vmul.f32 0.6931472, %v154_v16  ;;  %v29_v19 = vsub.f32 0.0, %v24_v15 }
  0x16   :  { %v30_v20 = vsub.f32 0.0, %v26_v17 }
  0x17   :  { %v191_v21 = vsub.f32 0.0, %v28_v18  ;;  %vm35_vm0 = vcmp.ge.f32.partialorder %v29_v19, 0.15  ;;  %32 = vst [vmem:[%s253_s1] sm:$0x3] %v29_v19 }
  0x18   :  { %vm36_vm1 = vcmp.ge.f32.partialorder %v30_v20, 0.15  ;;  %33 = vst [vmem:[%s253_s1 + $0x2] sm:$0x3] %v30_v20 }
  0x19   :  { %vm37_vm2 = vmand %vm35_vm0, %vm36_vm1  ;;  %vm38_vm3 = vcmp.ge.f32.partialorder %v191_v21, 0.15  ;;  %34 = vst [vmem:[%s253_s1 + $0x4] sm:$0x3] %v191_v21 }
  0x1a   :  { %vm39_vm5 = vmand %vm37_vm2, %vm38_vm3 }
  0x1b   :  { %v147_v22 = vsel %vm39_vm5, 1.0, %v155_v3 }
  0x1c   :  { %v43_v23 = vmul.f32 %v147_v22, %v29_v19  ;;  %v44_v24 = vmul.f32 %v147_v22, %v30_v20  ;;  %v45_v25 = vmul.f32 %v147_v22, %v191_v21  ;;  %42 = vst [vmem:[%s254_s2] sm:$0x3] %v147_v22  ;;  %v49_v26 = vsel %vm48_vm4, %v147_v22, 0.0 }
  0x1d   :  { %v50_v27 = vrot.slane %v49_v26, 4 }
  0x1e   :  { %v57_v28 = vsel %vm48_vm4, %v43_v23, 0.0  ;;  %v65_v29 = vsel %vm48_vm4, %v44_v24, 0.0  ;;  %v73_v30 = vsel %vm48_vm4, %v45_v25, 0.0  ;;  %v81_v31 = vmul.f32 %v43_v23, %v29_v19 }
  0x1f   :  { %v51_v32 = vadd.f32 %v50_v27, %v49_v26  ;;  %v58_v33 = vrot.slane %v57_v28, 4  ;;  %v66_v34 = vrot.slane %v65_v29, 4  ;;  %v74_v35 = vrot.slane %v73_v30, 4 }
  0x20   :  { %v82_v36 = vsel %vm48_vm4, %v81_v31, 0.0  ;;  %v90_v37 = vmul.f32 %v43_v23, %v30_v20  ;;  %v99_v38 = vmul.f32 %v43_v23, %v191_v21  ;;  %v108_v39 = vmul.f32 %v44_v24, %v30_v20 }
  0x21   :  { %v52_v40 = vrot.slane %v51_v32, 2  ;;  %v59_v41 = vadd.f32 %v58_v33, %v57_v28  ;;  %v67_v42 = vadd.f32 %v66_v34, %v65_v29  ;;  %v75_v43 = vadd.f32 %v74_v35, %v73_v30 }
  0x22   :  { %v83_v44 = vrot.slane %v82_v36, 4  ;;  %v91_v45 = vsel %vm48_vm4, %v90_v37, 0.0  ;;  %v100_v46 = vsel %vm48_vm4, %v99_v38, 0.0  ;;  %v109_v47 = vsel %vm48_vm4, %v108_v39, 0.0 }
  0x23   :  { %v53_v48 = vadd.f32 %v52_v40, %v51_v32  ;;  %v60_v49 = vrot.slane %v59_v41, 2  ;;  %v68_v50 = vrot.slane %v67_v42, 2  ;;  %v76_v51 = vrot.slane %v75_v43, 2 }
  0x24   :  { %v84_v52 = vadd.f32 %v83_v44, %v82_v36  ;;  %v92_v53 = vrot.slane %v91_v45, 4  ;;  %v101_v54 = vrot.slane %v100_v46, 4  ;;  %v110_v55 = vrot.slane %v109_v47, 4 }
  0x25   :  { %v54_v56 = vrot.slane %v53_v48, 1  ;;  %v61_v57 = vadd.f32 %v60_v49, %v59_v41  ;;  %v69_v58 = vadd.f32 %v68_v50, %v67_v42  ;;  %v77_v59 = vadd.f32 %v76_v51, %v75_v43 }
  0x26   :  { %v85_v60 = vrot.slane %v84_v52, 2  ;;  %v93_v61 = vadd.f32 %v92_v53, %v91_v45  ;;  %v102_v62 = vadd.f32 %v101_v54, %v100_v46  ;;  %v111_v63 = vadd.f32 %v110_v55, %v109_v47 }
  0x27   :  { %v55_v0 = vadd.f32 %v54_v56, %v53_v48  ;;  %v62_v1 = vrot.slane %v61_v57, 1  ;;  %v70_v2 = vrot.slane %v69_v58, 1  ;;  %v78_v3 = vrot.slane %v77_v59, 1 }
  0x28   :  { %v86_v4 = vadd.f32 %v85_v60, %v84_v52  ;;  %v94_v5 = vrot.slane %v93_v61, 2  ;;  %v103_v6 = vrot.slane %v102_v62, 2  ;;  %v112_v7 = vrot.slane %v111_v63, 2 }
  0x29   :  { %56 = vst [vmem:[%s252_s3] sm:$0x1] %v55_v0  ;;  %v63_v8 = vadd.f32 %v62_v1, %v61_v57  ;;  %v71_v9 = vadd.f32 %v70_v2, %v69_v58  ;;  %v79_v10 = vadd.f32 %v78_v3, %v77_v59  ;;  %v117_v11 = vmul.f32 %v44_v24, %v191_v21 }
  0x2a   :  { %v87_v12 = vrot.slane %v86_v4, 1  ;;  %v95_v13 = vadd.f32 %v94_v5, %v93_v61  ;;  %v104_v14 = vadd.f32 %v103_v6, %v102_v62  ;;  %v113_v15 = vadd.f32 %v112_v7, %v111_v63 }
  0x2b   :  { %64 = vst [vmem:[%s252_s3 + $0x1] sm:$0x1] %v63_v8  ;;  %72 = vst [vmem:[%s252_s3 + $0x2] sm:$0x1] %v71_v9  ;;  %v118_v16 = vsel %vm48_vm4, %v117_v11, 0.0  ;;  %v126_v17 = vmul.f32 %v45_v25, %v191_v21 }
  0x2c   :  { %80 = vst [vmem:[%s252_s3 + $0x3] sm:$0x1] %v79_v10  ;;  %v88_v18 = vadd.f32 %v87_v12, %v86_v4  ;;  %v96_v19 = vrot.slane %v95_v13, 1  ;;  %v105_v20 = vrot.slane %v104_v14, 1  ;;  %v114_v22 = vrot.slane %v113_v15, 1 }
  0x2d   :  { %v119_v23 = vrot.slane %v118_v16, 4  ;;  %v127_v24 = vsel %vm48_vm4, %v126_v17, 0.0 }
  0x2e   :  { %89 = vst [vmem:[%s252_s3 + $0x4] sm:$0x1] %v88_v18  ;;  %v97_v26 = vadd.f32 %v96_v19, %v95_v13  ;;  %v106_v27 = vadd.f32 %v105_v20, %v104_v14  ;;  %v115_v28 = vadd.f32 %v114_v22, %v113_v15  ;;  %v128_v29 = vrot.slane %v127_v24, 4 }
  0x2f   :  { %v120_v30 = vadd.f32 %v119_v23, %v118_v16 }
  0x30   :  { %98 = vst [vmem:[%s252_s3 + $0x5] sm:$0x1] %v97_v26  ;;  %107 = vst [vmem:[%s252_s3 + $0x6] sm:$0x1] %v106_v27  ;;  %v129_v21 = vadd.f32 %v128_v29, %v127_v24 }
  0x31   :  { %116 = vst [vmem:[%s252_s3 + $0x7] sm:$0x1] %v115_v28  ;;  %v121_v25 = vrot.slane %v120_v30, 2 }
  0x32   :  { %v130_v31 = vrot.slane %v129_v21, 2 }
  0x33   :  { %v122_v32 = vadd.f32 %v121_v25, %v120_v30 }
  0x34   :  { %v131_v33 = vadd.f32 %v130_v31, %v129_v21 }
  0x35   :  { %v123_v34 = vrot.slane %v122_v32, 1 }
  0x36   :  { %v132_v35 = vrot.slane %v131_v33, 1 }
  0x37   :  { %v124_v36 = vadd.f32 %v123_v34, %v122_v32 }
  0x38   :  { %v133_v37 = vadd.f32 %v132_v35, %v131_v33 }
  0x39   :  { %125 = vst [vmem:[%s252_s3 + $0x8] sm:$0x1] %v124_v36 }
  0x3a   :  { %134 = vst [vmem:[%s252_s3 + $0x9] sm:$0x1] %v133_v37 }

// kernel: custom-call.11
= control target key start
LH: loop header
LB: loop body
LE: loop exit
PB: predicated region body
PF: predicated region fallthrough
CT: control target
= control target key end

     0   :  { %5 = vsyncpa [#allocation6], 0  ;;  %v75_v1 = vlaneseq  ;;  %v526_v2 = vmov 0   ;;  %s555_s14 = smov 0   ;;  %s605_s0 = inlined_call_operand.vmem [shape: f32[2,2], index: 0, kind: input, shape index: {}]   ;;  %s606_s1 = inlined_call_operand.vmem [shape: f32[2,2], index: 1, kind: output, shape index: {0}]   ;;  %s607_s2 = inlined_call_operand.hbm [shape: s32[2], index: 2, kind: output, shape index: {1}]   ;;  %s608_s3 = inlined_call_operand.vmem [shape: s32[2], index: 3, kind: output, shape index: {2}]  }
   0x1   :  { %v66_v0 = vld [vmem:[%s605_s0] sm:$0x3]  ;;  %74 = vst [vmem:[#allocation4] sm:$0x1] %v526_v2 }
   0x2   :  { %67 = vst [vmem:[#allocation1] sm:$0x3] %v66_v0  ;;  %v552_v3 = vshrl.u32 %v75_v1, 7 }
   0x4   :  { %79 = vst [vmem:[#allocation9] sm:$0xff] %v552_v3 }
   0x9   :  { %v70_v4 = vld [vmem:[#allocation1] sm:$0x3] }
   0xa   :  { %71 = vst [vmem:[#allocation0] sm:$0x3] %v70_v4 }
  0x11   :  { %v72_v5 = vld [vmem:[#allocation0] sm:$0xff] }
  0x12   :  { %73 = vst [vmem:[#allocation2] sm:$0xff] %v72_v5 }
  0x13 LB: > { %vm95_vm0 = vcmp.lt.s32.totalorder %v552_v3, 2  ;;  %v562_v8 = vstv %s524_s14  ;;  %s136_s0 = ssub.s32 128, %s524_s14  ;;  %v142_v38 = vand.u32 127, %v75_v1  ;;  %v145_v40 = vld [vmem:[#allocation4] ss:$0 sm:$0xff]  ;;  %s148_s15 = scalar_lea.vmem [#allocation2], %s524_s14  ;;  %s524_s14 = sphi %s555_s14, %s85_s14  }
  0x14   : > { %vm94_vm1 = vcmp.ge.s32.totalorder %v552_v3, %v562_v8  ;;  %s154_s17 = scalar_lea.vmem [#allocation9], %s524_s14  ;;  %vm174_vm15 = vcmp.gt.s32.totalorder %v552_v3, %v562_v8  ;;  %s85_s14 = sadd.s32 1, %s524_s14  }
  0x15   : > { %vm96_vm3 = vmand %vm94_vm1, %vm95_vm0  ;;  %vm166_vm12 = vcmp.gt.s32.totalorder %v142_v38, %v562_v8  ;;  %vm143_vm13 = vcmp.eq.s32.totalorder %v142_v38, %v562_v8  ;;  %v156_v42 = vld [vmem:[%s154_s17] ss:$0 sm:$0xff]  ;;  %p82_p0 = scmp.ge.s32.totalorder %s85_s14, 2  }
  0x16   : > { %vm178_vm1 = vmand %vm174_vm15, %vm143_vm13  ;;  %s527_s20 = smov (%p82_p0), [#allocation5]  }
  0x17   :  { %s319_s21 = sshll.u32 (%p82_p0), %s527_s20, 4  ;;  %s320_s21 = int_to_ptr.vmem [resolvable:$true] %s319_s21 }
  0x18   :  { %s494_s24 = scalar_lea.vmem (%p82_p0), %s320_s21, 16  ;;  %s498_s25 = scalar_lea.vmem (%p82_p0), %s320_s21, 32 }
  0x19   : > { %v90_v6 = vld [vmem:[#allocation2] sm:$0xff]  ;;  %v150_v41 = vld [vmem:[%s148_s15] ss:$0 sm:$0xff]  ;;  %p495_p1 = scmp.ne.s32.totalorder (%p82_p0), %s320_s21, %s494_s24  ;;  %p499_p2 = scmp.lt.s32.totalorder (%p82_p0), %s320_s21, %s320_s21 }
  0x1a   : > { %v91_v7 = vand.u32 2147483647, %v90_v6  ;;  %p500_p3 = scmp.lt.s32.totalorder (%p82_p0), %s498_s25, %s494_s24 }
  0x1c   : > { %vm473_vm2 = vcmp.gt.f32.partialorder %v91_v7, -inf  ;;  %p501_p4 = por (%p82_p0), %p500_p3, %p499_p2 }
  0x1d   : > { %vm98_vm4 = vmand %vm96_vm3, %vm473_vm2 }
  0x1e   : > { %v99_v9 = vsel %vm98_vm4, %v552_v3, %v562_v8  ;;  %v100_v10 = vsel %vm98_vm4, %v91_v7, -inf  ;;  %p502_p5 = pnand (%p82_p0), %p501_p4, %p495_p1 }
  0x1f   : > { %v101_v11 = vrot.slane %v100_v10, 1  ;;  %v102_v12 = vrot.slane %v99_v9, 1 }
  0x21   : > { %vm103_vm5 = vcmp.ge.f32.partialorder %v101_v11, %v100_v10  ;;  %v106_v13 = vrot.slane %v101_v11, 1  ;;  %v107_v14 = vrot.slane %v102_v12, 1 }
  0x22   : > { %v104_v15 = vsel %vm103_vm5, %v101_v11, %v100_v10  ;;  %v105_v16 = vsel %vm103_vm5, %v102_v12, %v99_v9 }
  0x23   : > { %vm108_vm6 = vcmp.ge.f32.partialorder %v106_v13, %v104_v15  ;;  %v111_v17 = vrot.slane %v106_v13, 1  ;;  %v112_v18 = vrot.slane %v107_v14, 1 }
  0x24   : > { %v109_v19 = vsel %vm108_vm6, %v106_v13, %v104_v15  ;;  %v110_v20 = vsel %vm108_vm6, %v107_v14, %v105_v16 }
  0x25   : > { %vm113_vm7 = vcmp.ge.f32.partialorder %v111_v17, %v109_v19  ;;  %v116_v21 = vrot.slane %v111_v17, 1  ;;  %v117_v22 = vrot.slane %v112_v18, 1 }
  0x26   : > { %v114_v23 = vsel %vm113_vm7, %v111_v17, %v109_v19  ;;  %v115_v24 = vsel %vm113_vm7, %v112_v18, %v110_v20 }
  0x27   : > { %vm118_vm8 = vcmp.ge.f32.partialorder %v116_v21, %v114_v23  ;;  %v121_v25 = vrot.slane %v116_v21, 1  ;;  %v122_v26 = vrot.slane %v117_v22, 1 }
  0x28   : > { %v119_v27 = vsel %vm118_vm8, %v116_v21, %v114_v23  ;;  %v120_v28 = vsel %vm118_vm8, %v117_v22, %v115_v24 }
  0x29   : > { %vm123_vm9 = vcmp.ge.f32.partialorder %v121_v25, %v119_v27  ;;  %v126_v29 = vrot.slane %v121_v25, 1  ;;  %v127_v30 = vrot.slane %v122_v26, 1 }
  0x2a   : > { %v124_v31 = vsel %vm123_vm9, %v121_v25, %v119_v27  ;;  %v125_v32 = vsel %vm123_vm9, %v122_v26, %v120_v28 }
  0x2b   : > { %vm128_vm10 = vcmp.ge.f32.partialorder %v126_v29, %v124_v31  ;;  %v131_v33 = vrot.slane %v126_v29, 1  ;;  %v132_v34 = vrot.slane %v127_v30, 1 }
  0x2c   : > { %v129_v35 = vsel %vm128_vm10, %v126_v29, %v124_v31  ;;  %v130_v36 = vsel %vm128_vm10, %v127_v30, %v125_v32 }
  0x2d   : > { %vm133_vm11 = vcmp.ge.f32.partialorder %v131_v33, %v129_v35 }
  0x2e   : > { %v135_v37 = vsel %vm133_vm11, %v132_v34, %v130_v36 }
  0x2f   : > { %137 = vrot.lane.b32.xlu0 %v135_v37, %s136_s0 }
  0xa1   : > { %v138_v39 = vpop.permute.xlu0 %137 }
  0xa2   : > { %480 = vpush %v138_v39 }
  0xd3   : > { %s481_s16 = spop %480 }
  0xd4   : > { %v144_v43 = vstv %s481_s16  ;;  %s149_s18 = scalar_lea.vmem [#allocation2], %s481_s16  ;;  %s155_s19 = scalar_lea.vmem [#allocation9], %s481_s16 }
  0xd5   : > { %v151_v44 = vld [vmem:[%s149_s18] ss:$0 sm:$0xff]  ;;  %v146_v46 = vsel %vm143_vm13, %v144_v43, %v145_v40 }
  0xd6   : > { %v157_v45 = vld [vmem:[%s155_s19] ss:$0 sm:$0xff]  ;;  %152 = vst [vmem:[%s149_s18] sm:$0x1] %v150_v41  ;;  %vm160_vm14 = vcmp.ne.f32.partialorder %v151_v44, 0.0  ;;  %147 = vst [vmem:[#allocation4] sm:$0x1] %v146_v46 }
  0xd7   : > { %158 = vst [vmem:[%s155_s19] sm:$0x1] %v156_v42  ;;  %153 = vst [vmem:[%s148_s15] sm:$0x1] %v151_v44  ;;  %v167_v53 = vsel %vm166_vm12, %v151_v44, 0.0 }
  0xd8   : > { %159 = vst [vmem:[%s154_s17] sm:$0x1] %v157_v45  ;;  %vm161_vm0 = vmand %vm143_vm13, %vm160_vm14 }
  0xd9   : > { %v162_v47 = vsel %vm161_vm0, %v151_v44, 1.0 }
  0xda   : > { %v175_v48 = vsel %vm174_vm15, %v162_v47, 1.0 }
  0xdb   : > { %492 = vrcp.f32 %v175_v48 }
  0xdd   :  { %v243_v59 = vld [vmem:[#allocation4] sm:$0x1] (%p82_p0) }
  0xde   : > { %v171_v50 = vld [vmem:[#allocation2] sm:$0xff]  ;;  %245 = vst [vmem:[#allocation5] sm:$0x1] (%p82_p0), %v243_v59 }
  0xdf   :  { %v185_v57 = vld [vmem:[#allocation9] sm:$0xff] (%p82_p0) }
  0xe5   : > { %v493_v49 = vpop.eup %492 }
  0xe6   : > { %v177_v51 = vmul.f32 %v493_v49, %v171_v50 }
  0xe8   : > { %v179_v52 = vsel %vm178_vm1, %v177_v51, 0.0 }
  0xe9   : > { %180 = vadd.xlane.f32.xlu0 %v179_v52 }
 0x116   :  { %201 = vxpose.xlu0.b32.start.end [1/1] (short) (narrow) (%p82_p0), %v185_v57, 8 }
 0x175   :  { %84 = sbr.rel (!%p82_p0) target bundleno = 19 (0x13), region = 163 }
 0x176   : > { %v181_v54 = vpop.xlane.xlu0 %180 }
 0x177   : > { %v182_v55 = vmul.f32 %v181_v54, %v167_v53 }
 0x179   : > { %v183_v56 = vsub.f32 %v177_v51, %v182_v55 }
 0x17b   : > { %184 = vst [vmem:[#allocation2] sm:$0xff] %v183_v56 }
 0x182   :  { %v237_v58 = vld [vmem:[#allocation2] sm:$0x3] }
 0x183   :  { %239 = vst [vmem:[#allocation3] sm:$0x3] %v237_v58 }
 0x18a   :  { %v312_v60 = vld [vmem:[#allocation3] sm:$0x3] }
 0x18b   :  { %313 = vst [vmem:[%s606_s1] sm:$0x3] %v312_v60 }
 0x18c   :  { %505 = shalt.err (!%p502_p5)
}
 0x18d   :  { %s506_s28 = scalar_lea.hbm %s607_s2, 16 }
 0x18e   :  { %p507_p6 = scmp.ne.s32.totalorder %s607_s2, %s506_s28  ;;  %p510_p7 = scmp.lt.u32.totalorder %s506_s28, %s607_s2 }
 0x190   :  { %p512_p8 = pnand %p510_p7, %p507_p6 }
 0x192   :  { %515 = shalt.err (!%p512_p8)
}
 0x193   :  { %322 = dma.vmem_to_hbm [thread:$0]  %s320_s21, 16, %s607_s2, [#allocation6]  }
 0x196   :  { %v217_v61 = vpop.trf.xlu0 }
 0x197   :  { %233 = vst [vmem:[#allocation7] sm:$0x1] %v217_v61 }
 0x19e   :  { %v249_v62 = vld [vmem:[#allocation7] sm:$0x1] }
 0x19f   :  { %251 = vst [vmem:[#allocation8] sm:$0x1] %v249_v62 }
 0x1a6   :  { %v385_v63 = vld [vmem:[#allocation8] sm:$0x1] }
 0x1a7   :  { %386 = vst [vmem:[%s608_s3] sm:$0x1] %v385_v63 }
 0x1a8   :  { %520 = dma.done.wait [#allocation6], 16  }
 0x1a9   :  { %521 = vsyncadd [#allocation6], 4294967280 }
 0x1aa   :  { %392 = vsyncpa [#allocation6], 1 }

// kernel: custom-call.12
= control target key start
LH: loop header
LB: loop body
LE: loop exit
PB: predicated region body
PF: predicated region fallthrough
CT: control target
= control target key end

     0   :  { %v37_v1 = vlaneseq  ;;  %v127_v9 = vmov -1.0   ;;  %s150_s0 = inlined_call_operand.vmem [shape: f32[1,2,2], index: 0, kind: input, shape index: {}]   ;;  %s151_s1 = inlined_call_operand.vmem [shape: f32[1,2,2], index: 1, kind: output, shape index: {}]  }
   0x1   :  { %v17_v0 = vld [vmem:[%s150_s0] sm:$0x3] }
   0x2   :  { %18 = vst [vmem:[#allocation1] sm:$0x3] %v17_v0  ;;  %v38_v2 = vand.u32 127, %v37_v1  ;;  %v41_v3 = vshrl.u32 %v37_v1, 7 }
   0x4   :  { %vm39_vm0 = vcmp.lt.s32.totalorder %v38_v2, 2  ;;  %vm48_vm1 = vcmp.le.s32.totalorder %v41_v3, %v38_v2  ;;  %vm43_vm3 = vcmp.eq.s32.totalorder %v41_v3, %v38_v2  ;;  %vm59_vm4 = vcmp.eq.s32.totalorder %v38_v2, %v41_v3 }
   0x5   :  { %vm141_vm2 = vmand %vm48_vm1, %vm39_vm0  ;;  %vm62_vm5 = vcmp.eq.s32.totalorder %v38_v2, 1  ;;  %vm69_vm6 = vcmp.eq.s32.totalorder %v38_v2, 0 }
   0x6   :  { %v63_v10 = vsel %vm62_vm5, 1.0, %v127_v9 }
   0x7   :  { %v64_v11 = vsel %vm59_vm4, %v63_v10, 0.0 }
   0x9   :  { %v35_v5 = vld [vmem:[#allocation1] sm:$0x3] }
   0xa   :  { %36 = vst [vmem:[#allocation0] sm:$0x3] %v35_v5 }
  0x11   :  { %v44_v6 = vld [vmem:[#allocation0] sm:$0xff] }
  0x12   :  { %v45_v7 = vsel %vm43_vm3, %v44_v6, 0.0  ;;  %v50_v8 = vsel %vm141_vm2, %v44_v6, 0.0 }
  0x13   :  { %46 = vadd.xlane.f32.xlu0 %v45_v7 }
  0xa0   :  { %v47_v12 = vpop.xlane.xlu0 %46 }
  0xa1   :  { %125 = vrcp.f32 %v47_v12  ;;  %vm76_vm7 = vweird.f32 %v47_v12 }
  0xab   :  { %v126_v13 = vpop.eup %125 }
  0xac   :  { %v52_v14 = vmul.f32 %v126_v13, %v50_v8 }
  0xae   :  { %53 = vst [vmem:[#allocation4] sm:$0xff] %v52_v14 }
  0xb5   :  { %v65_v15 = vld [vmem:[#allocation4] ss:$0 sm:$0xff] }
  0xb6   :  { %v66_v16 = vxor.u32 2147483648, %v65_v15 }
  0xb8   :  { %v70_v17 = vmul.f32 %v66_v16, %v64_v11 }
  0xba   :  { %71 = vadd.xlane.f32.xlu0 %v70_v17 }
 0x147   :  { %v72_v18 = vpop.xlane.xlu0 %71 }
 0x148   :  { %v73_v19 = vsel %vm69_vm6, %v72_v18, %v64_v11 }
 0x149   :  { %v75_v20 = vmul.f32 %v126_v13, %v73_v19 }
 0x14b   :  { %v77_v21 = vsel %vm76_vm7, %v73_v19, %v75_v20 }
 0x14c   :  { %78 = vst [vmem:[#allocation2] sm:$0xff] %v77_v21 }
 0x153   :  { %v82_v22 = vld [vmem:[#allocation2] sm:$0x3] }
 0x154   :  { %84 = vst [vmem:[#allocation3] sm:$0x3] %v82_v22 }
 0x15b   :  { %v100_v23 = vld [vmem:[#allocation3] sm:$0x3] }
 0x15c   :  { %101 = vst [vmem:[%s151_s1] sm:$0x3] %v100_v23 }

// kernel: macenko_normalize.5
= control target key start
LH: loop header
LB: loop body
LE: loop exit
PB: predicated region body
PF: predicated region fallthrough
CT: control target
= control target key end

     0   :  { %7 = vsyncpa [#allocation3], 0  ;;  %s112_s0 = inlined_call_operand.vmem [shape: f32[2,3], index: 0, kind: input, shape index: {}]   ;;  %s113_s1 = inlined_call_operand.vmem [shape: f32[3,2,128], index: 1, kind: input, shape index: {}]   ;;  %s114_s2 = inlined_call_operand.vmem [shape: f32[2,2,128], index: 2, kind: output, shape index: {}]  }
   0x1   :  { %s14_s11 = sshll.u32 %s112_s0, 4  ;;  %s15_s11 = int_to_ptr.vmem [resolvable:$true] %s14_s11 }
   0x2   :  { %s64_s12 = scalar_lea.vmem %s15_s11, 32  ;;  %p69_p1 = scmp.lt.s32.totalorder %s15_s11, %s15_s11 }
   0x3   :  { %p65_p0 = scmp.ne.s32.totalorder %s15_s11, %s64_s12  ;;  %p70_p2 = scmp.lt.s32.totalorder %s64_s12, %s64_s12 }
   0x5   :  { %p71_p3 = por %p70_p2, %p69_p1 }
   0x7   :  { %p72_p4 = pnand %p71_p3, %p65_p0 }
   0x9   :  { %75 = shalt.err (!%p72_p4)
}
   0xa   :  { %s78_s13 = smov [#allocation2]  }
   0xb   :  { %17 = dma.vmem_to_smem %s15_s11, 32, %s78_s13, [#allocation3]  }
   0xc   :  { %76 = dma.done.wait [#allocation3], 32  }
   0xd   :  { %77 = vsyncadd [#allocation3], 4294967264 }
   0xe   :  { %23 = sfence }
   0xf   :  { %s27_s14 = sld [smem:[#allocation2]]  ;;  %s57_s15 = sld [smem:[#allocation2 + $0x1]]  ;;  %v24_v0 = vld [vmem:[%s113_s1] sm:$0x3]  ;;  %v25_v1 = vld [vmem:[%s113_s1 + $0x2] sm:$0x3] }
  0x10   :  { %s58_s16 = sld [smem:[#allocation2 + $0x2]]  ;;  %s59_s17 = sld [smem:[#allocation2 + $0x80]]  ;;  %v26_v2 = vld [vmem:[%s113_s1 + $0x4] sm:$0x3] }
  0x11   :  { %s60_s18 = sld [smem:[#allocation2 + $0x81]]  ;;  %s61_s19 = sld [smem:[#allocation2 + $0x82]] }
  0x15   :  { %v28_v3 = vstv %s27_s14  ;;  %v31_v4 = vstv %s57_s15 }
  0x16   :  { %v29_v5 = vmul.f32 %v28_v3, %v24_v0  ;;  %v32_v6 = vmul.f32 %v31_v4, %v25_v1  ;;  %v35_v7 = vstv %s58_s16  ;;  %v39_v8 = vstv %s59_s17 }
  0x17   :  { %v36_v9 = vmul.f32 %v35_v7, %v26_v2  ;;  %v40_v10 = vmul.f32 %v39_v8, %v24_v0  ;;  %v42_v11 = vstv %s60_s18  ;;  %v46_v12 = vstv %s61_s19 }
  0x18   :  { %v33_v13 = vadd.f32 %v32_v6, %v29_v5  ;;  %v43_v14 = vmul.f32 %v42_v11, %v25_v1  ;;  %v47_v15 = vmul.f32 %v46_v12, %v26_v2 }
  0x1a   :  { %v37_v16 = vadd.f32 %v36_v9, %v33_v13  ;;  %v44_v17 = vadd.f32 %v43_v14, %v40_v10 }
  0x1c   :  { %49 = vst [vmem:[%s114_s2] sm:$0x3] %v37_v16  ;;  %v48_v18 = vadd.f32 %v47_v15, %v44_v17 }
  0x1e   :  { %62 = vst [vmem:[%s114_s2 + $0x2] sm:$0x3] %v48_v18 }
  0x1f   :  { %56 = vsyncpa [#allocation3], 1 }

// kernel: custom-call.13
= control target key start
LH: loop header
LB: loop body
LE: loop exit
PB: predicated region body
PF: predicated region fallthrough
CT: control target
= control target key end

     0   :  { %v37_v1 = vlaneseq  ;;  %v128_v9 = vmov -1.0   ;;  %s151_s0 = inlined_call_operand.vmem [shape: f32[1,2,2], index: 0, kind: input, shape index: {}]   ;;  %s152_s1 = inlined_call_operand.vmem [shape: f32[1,2,2], index: 1, kind: output, shape index: {}]  }
   0x1   :  { %v17_v0 = vld [vmem:[%s151_s0] sm:$0x3] }
   0x2   :  { %18 = vst [vmem:[#allocation1] sm:$0x3] %v17_v0  ;;  %v38_v2 = vand.u32 127, %v37_v1  ;;  %v41_v3 = vshrl.u32 %v37_v1, 7 }
   0x4   :  { %vm39_vm0 = vcmp.lt.s32.totalorder %v38_v2, 2  ;;  %vm48_vm1 = vcmp.ge.s32.totalorder %v41_v3, %v38_v2  ;;  %vm43_vm3 = vcmp.eq.s32.totalorder %v41_v3, %v38_v2  ;;  %vm59_vm4 = vcmp.eq.s32.totalorder %v38_v2, %v41_v3 }
   0x5   :  { %vm142_vm2 = vmand %vm48_vm1, %vm39_vm0  ;;  %vm62_vm5 = vcmp.eq.s32.totalorder %v38_v2, 0  ;;  %vm70_vm6 = vcmp.eq.s32.totalorder %v38_v2, 1 }
   0x6   :  { %v63_v10 = vsel %vm62_vm5, 1.0, %v128_v9 }
   0x7   :  { %v64_v11 = vsel %vm59_vm4, %v63_v10, 0.0 }
   0x9   :  { %v35_v5 = vld [vmem:[#allocation1] sm:$0x3] }
   0xa   :  { %36 = vst [vmem:[#allocation0] sm:$0x3] %v35_v5 }
  0x11   :  { %v44_v6 = vld [vmem:[#allocation0] sm:$0xff] }
  0x12   :  { %v45_v7 = vsel %vm43_vm3, %v44_v6, 0.0  ;;  %v50_v8 = vsel %vm142_vm2, %v44_v6, 0.0 }
  0x13   :  { %46 = vadd.xlane.f32.xlu0 %v45_v7 }
  0xa0   :  { %v47_v12 = vpop.xlane.xlu0 %46 }
  0xa1   :  { %126 = vrcp.f32 %v47_v12  ;;  %vm77_vm7 = vweird.f32 %v47_v12 }
  0xab   :  { %v127_v13 = vpop.eup %126 }
  0xac   :  { %v52_v14 = vmul.f32 %v127_v13, %v50_v8 }
  0xae   :  { %53 = vst [vmem:[#allocation4] sm:$0xff] %v52_v14 }
  0xb5   :  { %v66_v15 = vld [vmem:[#allocation4 + $0x1] ss:$0 sm:$0xff] }
  0xb6   :  { %v67_v16 = vxor.u32 2147483648, %v66_v15 }
  0xb8   :  { %v71_v17 = vmul.f32 %v67_v16, %v64_v11 }
  0xba   :  { %72 = vadd.xlane.f32.xlu0 %v71_v17 }
 0x147   :  { %v73_v18 = vpop.xlane.xlu0 %72 }
 0x148   :  { %v74_v19 = vsel %vm70_vm6, %v73_v18, %v64_v11 }
 0x149   :  { %v76_v20 = vmul.f32 %v127_v13, %v74_v19 }
 0x14b   :  { %v78_v21 = vsel %vm77_vm7, %v74_v19, %v76_v20 }
 0x14c   :  { %79 = vst [vmem:[#allocation2] sm:$0xff] %v78_v21 }
 0x153   :  { %v83_v22 = vld [vmem:[#allocation2] sm:$0x3] }
 0x154   :  { %85 = vst [vmem:[#allocation3] sm:$0x3] %v83_v22 }
 0x15b   :  { %v101_v23 = vld [vmem:[#allocation3] sm:$0x3] }
 0x15c   :  { %102 = vst [vmem:[%s152_s1] sm:$0x3] %v101_v23 }

// kernel: macenko_normalize.7
= control target key start
LH: loop header
LB: loop body
LE: loop exit
PB: predicated region body
PF: predicated region fallthrough
CT: control target
= control target key end

     0   :  { %7 = vsyncpa [#allocation3], 0  ;;  %s130_s0 = inlined_call_operand.vmem [shape: f32[2,2,128], index: 0, kind: input, shape index: {}]   ;;  %s131_s1 = inlined_call_operand.vmem [shape: f32[2], index: 1, kind: input, shape index: {}]   ;;  %s132_s2 = inlined_call_operand.vmem [shape: f32[3,2,128], index: 2, kind: output, shape index: {}]  }
   0x1   :  { %s16_s11 = sshll.u32 %s131_s1, 4  ;;  %s17_s11 = int_to_ptr.vmem [resolvable:$true] %s16_s11 }
   0x2   :  { %s82_s12 = scalar_lea.vmem %s17_s11, 16  ;;  %p87_p1 = scmp.lt.s32.totalorder %s17_s11, %s17_s11 }
   0x3   :  { %p83_p0 = scmp.ne.s32.totalorder %s17_s11, %s82_s12  ;;  %p88_p2 = scmp.lt.s32.totalorder %s82_s12, %s82_s12 }
   0x5   :  { %p89_p3 = por %p88_p2, %p87_p1 }
   0x7   :  { %p90_p4 = pnand %p89_p3, %p83_p0 }
   0x9   :  { %93 = shalt.err (!%p90_p4)
}
   0xa   :  { %s96_s13 = smov [#allocation2]  }
   0xb   :  { %19 = dma.vmem_to_smem %s17_s11, 16, %s96_s13, [#allocation3]  }
   0xc   :  { %94 = dma.done.wait [#allocation3], 16  }
   0xd   :  { %95 = vsyncadd [#allocation3], 4294967280 }
   0xe   :  { %23 = sfence }
   0xf   :  { %s26_s14 = sld [smem:[#allocation2]]  ;;  %s72_s15 = sld [smem:[#allocation2 + $0x1]]  ;;  %v24_v0 = vld [vmem:[%s130_s0] sm:$0x3]  ;;  %v25_v1 = vld [vmem:[%s130_s0 + $0x2] sm:$0x3] }
  0x15   :  { %v27_v2 = vstv %s26_s14  ;;  %v30_v4 = vstv %s72_s15 }
  0x16   :  { %v28_v3 = vmul.f32 %v27_v2, %v24_v0  ;;  %v31_v5 = vmul.f32 %v30_v4, %v25_v1 }
  0x18   :  { %v32_v6 = vmul.f32 0.5626, %v28_v3  ;;  %v43_v7 = vmul.f32 0.7201, %v28_v3  ;;  %v55_v8 = vmul.f32 0.4062, %v28_v3 }
  0x19   :  { %v33_v9 = vmul.f32 0.2159, %v31_v5  ;;  %v44_v10 = vmul.f32 0.8012, %v31_v5  ;;  %v56_v11 = vmul.f32 0.5581, %v31_v5 }
  0x1b   :  { %v34_v12 = vadd.f32 %v33_v9, %v32_v6  ;;  %v45_v13 = vadd.f32 %v44_v10, %v43_v7  ;;  %v57_v14 = vadd.f32 %v56_v11, %v55_v8 }
  0x1d   :  { %v35_v15 = vsub.f32 0.0, %v34_v12  ;;  %v46_v16 = vsub.f32 0.0, %v45_v13  ;;  %v58_v17 = vsub.f32 0.0, %v57_v14 }
  0x1f   :  { %v36_v18 = vmul.f32 1.442695, %v35_v15  ;;  %v47_v19 = vmul.f32 1.442695, %v46_v16  ;;  %v59_v20 = vmul.f32 1.442695, %v58_v17 }
  0x21   :  { %76 = vpow2.f32 %v36_v18 }
  0x22   :  { %78 = vpow2.f32 %v47_v19 }
  0x23   :  { %80 = vpow2.f32 %v59_v20 }
  0x2b   :  { %v77_v21 = vpop.eup %76 }
  0x2c   :  { %v79_v22 = vpop.eup %78  ;;  %v38_v23 = vmul.f32 240.0, %v77_v21 }
  0x2d   :  { %v81_v24 = vpop.eup %80  ;;  %v49_v25 = vmul.f32 240.0, %v79_v22 }
  0x2e   :  { %v39_v26 = vmin.f32 %v38_v23, 255.0  ;;  %v61_v27 = vmul.f32 240.0, %v81_v24 }
  0x2f   :  { %v50_v28 = vmin.f32 %v49_v25, 255.0 }
  0x30   :  { %v40_v29 = vfloor.f32 %v39_v26  ;;  %v62_v30 = vmin.f32 %v61_v27, 255.0 }
  0x31   :  { %v51_v31 = vfloor.f32 %v50_v28 }
  0x32   :  { %v41_v32 = vmul.f32 0.003921569, %v40_v29  ;;  %v63_v33 = vfloor.f32 %v62_v30 }
  0x33   :  { %v52_v34 = vmul.f32 0.003921569, %v51_v31 }
  0x34   :  { %42 = vst [vmem:[%s132_s2] sm:$0x3] %v41_v32  ;;  %v64_v35 = vmul.f32 0.003921569, %v63_v33 }
  0x35   :  { %73 = vst [vmem:[%s132_s2 + $0x2] sm:$0x3] %v52_v34 }
  0x36   :  { %74 = vst [vmem:[%s132_s2 + $0x4] sm:$0x3] %v64_v35 }
  0x37   :  { %71 = vsyncpa [#allocation3], 1 }

</bundles_post_ra>
